<compile_context>
chip_gen: v7x
topology: tpu7x:2x2x1
jax: 0.10.0
libtpu: 0.0.40
codegen_flags: <defaults>
</compile_context>

<pallas_src>
import functools
import math

import jax
import jax.numpy as jnp
from jax.experimental import pallas as pl
from jax.experimental.pallas import tpu as pltpu

NEG_INF = -1e9
LN_EPS = 1e-6

# Row layout of the packed per-layer (16, D) vector slab.
_BQ1, _BK1, _BV1, _BO1 = 0, 1, 2, 3          # self-attn projection biases
_BQ2, _BK2, _BV2, _BO2 = 4, 5, 6, 7          # enc-dec attn projection biases
_G1, _B1, _G2, _B2, _G3, _B3 = 8, 9, 10, 11, 12, 13   # LayerNorm gamma/beta
_BF2 = 14                                     # FFN output bias (row 15 is zero pad)


# ----------------------------- kernel helpers -----------------------------

def _layer_norm(x, g, b):
  mu = jnp.mean(x, axis=-1, keepdims=True)
  var = jnp.mean((x - mu) ** 2, axis=-1, keepdims=True)
  return (x - mu) * jax.lax.rsqrt(var + LN_EPS) * g + b


def _attention_heads(q, k, v, bias, n_heads, ctx_ref):
  """Scaled dot-product attention; per-head contexts are written directly into the
  (Sq, D) VMEM scratch slab `ctx_ref` (no concatenate / relayout copies)."""
  d_model = q.shape[-1]
  dh = d_model // n_heads
  scale = 1.0 / float(dh) ** 0.5
  q = q.astype(jnp.bfloat16)
  k = k.astype(jnp.bfloat16)
  v = v.astype(jnp.bfloat16)
  for h in range(n_heads):                     # static unroll, small n_heads
    sl = slice(h * dh, (h + 1) * dh)
    # scores[i, j] = sum_e q[i, e] * k[j, e]  (bf16 in, f32 accumulate)
    s = jax.lax.dot_general(q[:, sl], k[:, sl], (((1,), (1,)), ((), ())),
                            preferred_element_type=jnp.float32) * scale
    s = s + bias                               # additive mask bias (mask * -1e9)
    s = s - jnp.max(s, axis=-1, keepdims=True)
    p = jnp.exp(s)
    p = p * pl.reciprocal(jnp.sum(p, axis=-1, keepdims=True), approx=True)
    ctx_ref[:, sl] = jnp.dot(p.astype(jnp.bfloat16), v[:, sl],
                             preferred_element_type=jnp.float32)


# ----------------------------- fused decoder-stack kernel -----------------------------

def decoder_stack_kernel(x_ref, enc_ref, b1_ref, b2_ref,
                         wqkv1_ref, wo1_ref, wq2_ref, wkv2_ref, wo2_ref,
                         wf1_ref, wf2_ref, bf1_ref, vec_ref,
                         o_ref, act_ref, ctx_ref, *, n_heads):
  layer = pl.program_id(0)
  b = pl.program_id(1)

  @pl.when(layer == 0)
  def _():
    act_ref[b] = x_ref[0].astype(jnp.float32)

  x = act_ref[b]                       # (S, D) f32 running activation for this example
  enc = enc_ref[0].astype(jnp.float32)  # (Se, D)
  vec = vec_ref[0]                     # (16, D) packed biases + LN params (f32)
  bias1 = b1_ref[0]                    # (S, S)  additive causal mask bias
  bias2 = b2_ref[0]                    # (S, Se) additive padding mask bias
  d_model = x.shape[-1]

  # ---- 1) causal self-attention + residual + LN  (dropout == identity in eval) ----
  qkv = jnp.dot(x.astype(jnp.bfloat16), wqkv1_ref[0],
                preferred_element_type=jnp.float32)           # (S, 3D) fused projection
  q = qkv[:, :d_model] + vec[_BQ1:_BQ1 + 1]
  k = qkv[:, d_model:2 * d_model] + vec[_BK1:_BK1 + 1]
  v = qkv[:, 2 * d_model:] + vec[_BV1:_BV1 + 1]
  _attention_heads(q, k, v, bias1, n_heads, ctx_ref)
  attn = jnp.dot(ctx_ref[...].astype(jnp.bfloat16), wo1_ref[0],
                 preferred_element_type=jnp.float32) + vec[_BO1:_BO1 + 1]
  x1 = _layer_norm(attn + x, vec[_G1:_G1 + 1], vec[_B1:_B1 + 1])

  # ---- 2) encoder-decoder attention + residual + LN ----
  q2 = jnp.dot(x1.astype(jnp.bfloat16), wq2_ref[0],
               preferred_element_type=jnp.float32) + vec[_BQ2:_BQ2 + 1]
  kv2 = jnp.dot(enc.astype(jnp.bfloat16), wkv2_ref[0],
                preferred_element_type=jnp.float32)           # (Se, 2D) fused K/V
  k2 = kv2[:, :d_model] + vec[_BK2:_BK2 + 1]
  v2 = kv2[:, d_model:] + vec[_BV2:_BV2 + 1]
  _attention_heads(q2, k2, v2, bias2, n_heads, ctx_ref)
  attn2 = jnp.dot(ctx_ref[...].astype(jnp.bfloat16), wo2_ref[0],
                  preferred_element_type=jnp.float32) + vec[_BO2:_BO2 + 1]
  x2 = _layer_norm(attn2 + x1, vec[_G2:_G2 + 1], vec[_B2:_B2 + 1])

  # ---- 3) position-wise FFN + residual + LN ----
  h = jnp.dot(x2.astype(jnp.bfloat16), wf1_ref[0],
              preferred_element_type=jnp.float32) + bf1_ref[0]
  h = jnp.maximum(h, 0.0)
  ff = jnp.dot(h.astype(jnp.bfloat16), wf2_ref[0],
               preferred_element_type=jnp.float32) + vec[_BF2:_BF2 + 1]
  x3 = _layer_norm(ff + x2, vec[_G3:_G3 + 1], vec[_B3:_B3 + 1])

  act_ref[b] = x3

  @pl.when(layer == pl.num_programs(0) - 1)
  def _():
    o_ref[0] = x3.astype(o_ref.dtype)


def decoder_stack_call(x, enc, bias1, bias2, w, n_heads):
  B, S, D = x.shape
  Se = enc.shape[1]
  L = w["w_qkv1"].shape[0]

  weight_order = ["w_qkv1", "w_o1", "w_q2", "w_kv2", "w_o2", "w_f1", "w_f2",
                  "b_f1", "vecs"]
  weight_arrays = [w[name] for name in weight_order]

  def data_map(l, b):   # per-example blocks
    return (b, 0, 0)

  def weight_map(l, b):  # block index changes only at layer boundaries -> one DMA/layer
    return (l, 0, 0)

  in_specs = ([
      pl.BlockSpec((1, S, D), data_map),      # x (embedded decoder input)
      pl.BlockSpec((1, Se, D), data_map),     # encoder outputs
      pl.BlockSpec((1, S, S), data_map),      # causal mask bias
      pl.BlockSpec((1, S, Se), data_map),     # enc-dec padding mask bias (per-example)
  ] + [pl.BlockSpec((1,) + arr.shape[1:], weight_map) for arr in weight_arrays])

  # Explicit VMEM budget: double-buffered weight/data blocks + scratch (+50% margin).
  wblock = sum(math.prod(a.shape[1:]) * a.dtype.itemsize for a in weight_arrays)
  dblock = (S * D + Se * D + S * S + S * Se + S * D) * 4
  scratch = (B * S * D + S * D) * 4
  vmem_limit = int(min(110 * 2**20,
                       max(32 * 2**20, int(1.5 * (2 * (wblock + dblock) + scratch))
                           + (4 << 20))))

  kernel = functools.partial(decoder_stack_kernel, n_heads=n_heads)
  return pl.pallas_call(
      kernel,
      out_shape=jax.ShapeDtypeStruct((B, S, D), x.dtype),
      grid_spec=pltpu.PrefetchScalarGridSpec(
          num_scalar_prefetch=0,
          grid=(L, B),                               # layers OUTER, batch inner
          in_specs=in_specs,
          out_specs=pl.BlockSpec((1, S, D), data_map),
          scratch_shapes=[pltpu.VMEM((B, S, D), jnp.float32),   # activation carry
                          pltpu.VMEM((S, D), jnp.float32)],     # per-head context slab
      ),
      # TODO(synk): use pltpu.CORE_PARALLEL on the batch axis for v7x megacore sharding.
      compiler_params=pltpu.CompilerParams(
          dimension_semantics=("arbitrary", "parallel"),
          vmem_limit_bytes=vmem_limit),
  )(x, enc, bias1, bias2, *weight_arrays)


# ----------------------------- glue: params, embedding, pos-enc -----------------------------

def init_decoder_params(key, n_layers, vocab_size, d_model, n_heads, ffn_units):
  k_emb, *k_layers = jax.random.split(key, n_layers + 1)
  params = {"emb": jax.random.normal(k_emb, (vocab_size, d_model), jnp.float32)}

  acc = {n: [] for n in ["w_qkv1", "w_o1", "w_q2", "w_kv2", "w_o2",
                         "w_f1", "w_f2", "b_f1", "vecs"]}
  for kl in k_layers:
    ks = iter(jax.random.split(kl, 24))

    def lin(shape, fan_in):
      bound = 1.0 / float(fan_in) ** 0.5
      return jax.random.uniform(next(ks), shape, jnp.float32, -bound, bound)

    # self-attention q/k/v/o
    wq1, bq1 = lin((d_model, d_model), d_model), lin((d_model,), d_model)
    wk1, bk1 = lin((d_model, d_model), d_model), lin((d_model,), d_model)
    wv1, bv1 = lin((d_model, d_model), d_model), lin((d_model,), d_model)
    wo1, bo1 = lin((d_model, d_model), d_model), lin((d_model,), d_model)
    # enc-dec attention q/k/v/o
    wq2, bq2 = lin((d_model, d_model), d_model), lin((d_model,), d_model)
    wk2, bk2 = lin((d_model, d_model), d_model), lin((d_model,), d_model)
    wv2, bv2 = lin((d_model, d_model), d_model), lin((d_model,), d_model)
    wo2, bo2 = lin((d_model, d_model), d_model), lin((d_model,), d_model)
    # FFN
    wf1, bf1 = lin((d_model, ffn_units), d_model), lin((ffn_units,), d_model)
    wf2, bf2 = lin((ffn_units, d_model), ffn_units), lin((d_model,), ffn_units)
    # LayerNorms
    ones, zeros = jnp.ones((d_model,), jnp.float32), jnp.zeros((d_model,), jnp.float32)

    acc["w_qkv1"].append(jnp.concatenate([wq1, wk1, wv1], axis=-1))   # (D, 3D)
    acc["w_o1"].append(wo1)
    acc["w_q2"].append(wq2)
    acc["w_kv2"].append(jnp.concatenate([wk2, wv2], axis=-1))          # (D, 2D)
    acc["w_o2"].append(wo2)
    acc["w_f1"].append(wf1)
    acc["w_f2"].append(wf2)
    acc["b_f1"].append(bf1.reshape(1, ffn_units))
    acc["vecs"].append(jnp.stack([bq1, bk1, bv1, bo1,
                                  bq2, bk2, bv2, bo2,
                                  ones, zeros, ones, zeros, ones, zeros,
                                  bf2, jnp.zeros((d_model,), jnp.float32)]))  # (16, D)

  bf16_names = ["w_qkv1", "w_o1", "w_q2", "w_kv2", "w_o2", "w_f1", "w_f2"]
  params["stacked"] = {
      n: jnp.stack(acc[n]).astype(jnp.bfloat16 if n in bf16_names else jnp.float32)
      for n in acc
  }
  return params


def positional_encoding(seq_len, d_model):
  pos = jnp.arange(seq_len, dtype=jnp.float32)[:, None]
  i = jnp.arange(d_model)[None, :]
  angle_rates = 1.0 / jnp.power(10000.0, (2 * (i // 2)).astype(jnp.float32) / d_model)
  angles = pos * angle_rates
  return jnp.where(i % 2 == 0, jnp.sin(angles), jnp.cos(angles)).astype(jnp.float32)


def decoder_forward(tokens, enc_outputs, mask_1, mask_2, params, n_heads):
  d_model = params["emb"].shape[1]
  B, S = tokens.shape
  Se = enc_outputs.shape[1]
  assert d_model % n_heads == 0
  # Embedding gather kept as plain-JAX glue.  # TODO(synk): embedding gather not in-kernel.
  x = jnp.take(params["emb"], tokens, axis=0) * jnp.sqrt(jnp.float32(d_model))
  x = x + positional_encoding(S, d_model)[None, :, :]
  # Dropout: identity in eval mode.
  # Additive mask biases (mask convention: 1.0 = masked), broadcast per batch element.
  # TODO(synk): generate the causal look-ahead bias in-kernel via iota on v7x.
  bias1 = jnp.broadcast_to(jnp.asarray(mask_1, jnp.float32) * NEG_INF, (B, S, S))
  bias2 = jnp.broadcast_to(jnp.asarray(mask_2, jnp.float32) * NEG_INF, (B, S, Se))
  return decoder_stack_call(x, enc_outputs.astype(jnp.float32), bias1, bias2,
                            params["stacked"], n_heads)


# ----------------------------- main -----------------------------

if __name__ == "__main__":
  B, S_dec, S_enc = 2, 8, 8
  d_model, n_heads, ffn_units = 32, 4, 64
  n_layers, vocab_size = 2, 50

  key = jax.random.PRNGKey(0)
  kp, kt, ke = jax.random.split(key, 3)

  params = init_decoder_params(kp, n_layers, vocab_size, d_model, n_heads, ffn_units)
  tokens = jax.random.randint(kt, (B, S_dec), 0, vocab_size, dtype=jnp.int32)
  enc_outputs = jax.random.normal(ke, (B, S_enc, d_model), jnp.float32)

  # mask convention: 1.0 = masked position (added to scores as mask * -1e9)
  mask_1 = jnp.triu(jnp.ones((S_dec, S_dec), jnp.float32), k=1)  # causal look-ahead mask
  mask_2 = jnp.zeros((S_dec, S_enc), jnp.float32)                # no padding mask

  out = decoder_forward(tokens, enc_outputs, mask_1, mask_2, params, n_heads)
  jax.block_until_ready(out)
  assert out.shape == (B, S_dec, d_model) and out.dtype == jnp.float32
  assert bool(jnp.all(jnp.isfinite(out)))
  print("KERNEL_OK")
</pallas_src>

<mosaic_0001>
module attributes {stable_mosaic.version = 11 : i64} {
  func.func @decoder_stack_kernel(%arg0: i32, %arg1: i32, %arg2: memref<1x8x32xf32, #tpu.memory_space<vmem>>, %arg3: memref<1x8x32xf32, #tpu.memory_space<vmem>>, %arg4: memref<1x8x8xf32, #tpu.memory_space<vmem>>, %arg5: memref<1x8x8xf32, #tpu.memory_space<vmem>>, %arg6: memref<1x32x96xbf16, #tpu.memory_space<vmem>>, %arg7: memref<1x32x32xbf16, #tpu.memory_space<vmem>>, %arg8: memref<1x32x32xbf16, #tpu.memory_space<vmem>>, %arg9: memref<1x32x64xbf16, #tpu.memory_space<vmem>>, %arg10: memref<1x32x32xbf16, #tpu.memory_space<vmem>>, %arg11: memref<1x32x64xbf16, #tpu.memory_space<vmem>>, %arg12: memref<1x64x32xbf16, #tpu.memory_space<vmem>>, %arg13: memref<1x1x64xf32, #tpu.memory_space<vmem>>, %arg14: memref<1x16x32xf32, #tpu.memory_space<vmem>>, %arg15: memref<1x8x32xf32, #tpu.memory_space<vmem>>, %arg16: memref<2x8x32xf32, #tpu.memory_space<vmem>>, %arg17: memref<8x32xf32, #tpu.memory_space<vmem>>) attributes {dimension_semantics = [#tpu.dimension_semantics<arbitrary>, #tpu.dimension_semantics<parallel>], iteration_bounds = array<i64: 2, 2>, scalar_prefetch = 0 : i64, scratch_operands = 2 : i64, tpu.core_type = #tpu.core_type<tc>, window_params = [{transform_indices = @transform_0, window_bounds = array<i64: 1, 8, 32>}, {transform_indices = @transform_1, window_bounds = array<i64: 1, 8, 32>}, {transform_indices = @transform_2, window_bounds = array<i64: 1, 8, 8>}, {transform_indices = @transform_3, window_bounds = array<i64: 1, 8, 8>}, {transform_indices = @transform_4, window_bounds = array<i64: 1, 32, 96>}, {transform_indices = @transform_5, window_bounds = array<i64: 1, 32, 32>}, {transform_indices = @transform_6, window_bounds = array<i64: 1, 32, 32>}, {transform_indices = @transform_7, window_bounds = array<i64: 1, 32, 64>}, {transform_indices = @transform_8, window_bounds = array<i64: 1, 32, 32>}, {transform_indices = @transform_9, window_bounds = array<i64: 1, 32, 64>}, {transform_indices = @transform_10, window_bounds = array<i64: 1, 64, 32>}, {transform_indices = @transform_11, window_bounds = array<i64: 1, 1, 64>}, {transform_indices = @transform_12, window_bounds = array<i64: 1, 16, 32>}, {transform_indices = @transform_13, window_bounds = array<i64: 1, 8, 32>}]} {
    %c0_i32 = arith.constant 0 : i32
    %0 = arith.cmpi eq, %arg0, %c0_i32 : i32
    %1 = arith.extui %0 : i1 to i32
    %c0_i32_0 = arith.constant 0 : i32
    %2 = arith.cmpi ne, %1, %c0_i32_0 : i32
    scf.if %2 {
      %c0_120 = arith.constant 0 : index
      %c0_121 = arith.constant 0 : index
      %c0_122 = arith.constant 0 : index
      %330 = vector.load %arg2[%c0_120, %c0_121, %c0_122] : memref<1x8x32xf32, #tpu.memory_space<vmem>>, vector<1x8x32xf32>
      %331 = vector.shape_cast %330 : vector<1x8x32xf32> to vector<8x32xf32>
      %332 = arith.index_cast %arg1 : i32 to index
      %c0_123 = arith.constant 0 : index
      %c0_124 = arith.constant 0 : index
      %333 = vector.load %arg16[%332, %c0_123, %c0_124] : memref<2x8x32xf32, #tpu.memory_space<vmem>>, vector<1x8x32xf32>
      %334 = vector.shape_cast %333 : vector<1x8x32xf32> to vector<8x32xf32>
      %335 = vector.shape_cast %331 : vector<8x32xf32> to vector<1x8x32xf32>
      tpu.vector_store %arg16[%332, %c0_123, %c0_124], %335 {strides = array<i32>} : memref<2x8x32xf32, #tpu.memory_space<vmem>>, vector<1x8x32xf32>,
    } else {
    }
    %3 = arith.index_cast %arg1 : i32 to index
    %c0 = arith.constant 0 : index
    %c0_1 = arith.constant 0 : index
    %4 = vector.load %arg16[%3, %c0, %c0_1] : memref<2x8x32xf32, #tpu.memory_space<vmem>>, vector<1x8x32xf32>
    %5 = vector.shape_cast %4 : vector<1x8x32xf32> to vector<8x32xf32>
    %c0_2 = arith.constant 0 : index
    %c0_3 = arith.constant 0 : index
    %c0_4 = arith.constant 0 : index
    %6 = vector.load %arg3[%c0_2, %c0_3, %c0_4] : memref<1x8x32xf32, #tpu.memory_space<vmem>>, vector<1x8x32xf32>
    %7 = vector.shape_cast %6 : vector<1x8x32xf32> to vector<8x32xf32>
    %c0_5 = arith.constant 0 : index
    %c0_6 = arith.constant 0 : index
    %c0_7 = arith.constant 0 : index
    %8 = vector.load %arg14[%c0_5, %c0_6, %c0_7] : memref<1x16x32xf32, #tpu.memory_space<vmem>>, vector<1x16x32xf32>
    %9 = vector.shape_cast %8 : vector<1x16x32xf32> to vector<16x32xf32>
    %c0_8 = arith.constant 0 : index
    %c0_9 = arith.constant 0 : index
    %c0_10 = arith.constant 0 : index
    %10 = vector.load %arg4[%c0_8, %c0_9, %c0_10] : memref<1x8x8xf32, #tpu.memory_space<vmem>>, vector<1x8x8xf32>
    %11 = vector.shape_cast %10 : vector<1x8x8xf32> to vector<8x8xf32>
    %c0_11 = arith.constant 0 : index
    %c0_12 = arith.constant 0 : index
    %c0_13 = arith.constant 0 : index
    %12 = vector.load %arg5[%c0_11, %c0_12, %c0_13] : memref<1x8x8xf32, #tpu.memory_space<vmem>>, vector<1x8x8xf32>
    %13 = vector.shape_cast %12 : vector<1x8x8xf32> to vector<8x8xf32>
    %14 = arith.truncf %5 : vector<8x32xf32> to vector<8x32xbf16>
    %c0_14 = arith.constant 0 : index
    %c0_15 = arith.constant 0 : index
    %c0_16 = arith.constant 0 : index
    %15 = vector.load %arg6[%c0_14, %c0_15, %c0_16] : memref<1x32x96xbf16, #tpu.memory_space<vmem>>, vector<1x32x96xbf16>
    %16 = vector.shape_cast %15 : vector<1x32x96xbf16> to vector<32x96xbf16>
    %cst = arith.constant dense<0.000000e+00> : vector<8x96xf32>
    %17 = tpu.matmul %14, %16, %cst {dimension_numbers = #tpu.dot_dimension_numbers<[1], [0], [0], [1], [0, 0, 1, 1], [], []>} : vector<8x32xbf16>, vector<32x96xbf16>, vector<8x96xf32> -> vector<8x96xf32>
    %18 = vector.extract_strided_slice %17 {offsets = [0, 0], sizes = [8, 32], strides = [1, 1]} : vector<8x96xf32> to vector<8x32xf32>
    %19 = vector.extract_strided_slice %9 {offsets = [0, 0], sizes = [1, 32], strides = [1, 1]} : vector<16x32xf32> to vector<1x32xf32>
    %20 = vector.broadcast %19 : vector<1x32xf32> to vector<8x32xf32>
    %21 = arith.addf %18, %20 : vector<8x32xf32>
    %22 = vector.extract_strided_slice %17 {offsets = [0, 32], sizes = [8, 32], strides = [1, 1]} : vector<8x96xf32> to vector<8x32xf32>
    %23 = vector.extract_strided_slice %9 {offsets = [1, 0], sizes = [1, 32], strides = [1, 1]} : vector<16x32xf32> to vector<1x32xf32>
    %24 = vector.broadcast %23 : vector<1x32xf32> to vector<8x32xf32>
    %25 = arith.addf %22, %24 : vector<8x32xf32>
    %26 = vector.extract_strided_slice %17 {offsets = [0, 64], sizes = [8, 32], strides = [1, 1]} : vector<8x96xf32> to vector<8x32xf32>
    %27 = vector.extract_strided_slice %9 {offsets = [2, 0], sizes = [1, 32], strides = [1, 1]} : vector<16x32xf32> to vector<1x32xf32>
    %28 = vector.broadcast %27 : vector<1x32xf32> to vector<8x32xf32>
    %29 = arith.addf %26, %28 : vector<8x32xf32>
    %30 = arith.truncf %21 : vector<8x32xf32> to vector<8x32xbf16>
    %31 = arith.truncf %25 : vector<8x32xf32> to vector<8x32xbf16>
    %32 = arith.truncf %29 : vector<8x32xf32> to vector<8x32xbf16>
    %33 = vector.extract_strided_slice %30 {offsets = [0, 0], sizes = [8, 8], strides = [1, 1]} : vector<8x32xbf16> to vector<8x8xbf16>
    %34 = vector.extract_strided_slice %31 {offsets = [0, 0], sizes = [8, 8], strides = [1, 1]} : vector<8x32xbf16> to vector<8x8xbf16>
    %cst_17 = arith.constant dense<0.000000e+00> : vector<8x8xf32>
    %35 = tpu.matmul %33, %34, %cst_17 {dimension_numbers = #tpu.dot_dimension_numbers<[1], [1], [0], [0], [0, 0, 1, 0], [], []>} : vector<8x8xbf16>, vector<8x8xbf16>, vector<8x8xf32> -> vector<8x8xf32>
    %cst_18 = arith.constant 0.353553385 : f32
    %36 = vector.broadcast %cst_18 : f32 to vector<8x8xf32>
    %37 = arith.mulf %35, %36 : vector<8x8xf32>
    %38 = arith.addf %37, %11 : vector<8x8xf32>
    %cst_19 = arith.constant dense<0xFF800000> : vector<8xf32>
    %39 = vector.multi_reduction <maximumf>, %38, %cst_19 [1] : vector<8x8xf32> to vector<8xf32>
    %40 = vector.shape_cast %39 : vector<8xf32> to vector<8x1xf32>
    %41 = vector.broadcast %40 : vector<8x1xf32> to vector<8x8xf32>
    %42 = arith.subf %38, %41 : vector<8x8xf32>
    %43 = math.exp %42 : vector<8x8xf32>
    %cst_20 = arith.constant dense<0.000000e+00> : vector<8xf32>
    %44 = vector.multi_reduction <add>, %43, %cst_20 [1] : vector<8x8xf32> to vector<8xf32>
    %45 = vector.shape_cast %44 : vector<8xf32> to vector<8x1xf32>
    %46 = tpu.reciprocal %45 {approx = true} : vector<8x1xf32> -> vector<8x1xf32>
    %47 = vector.broadcast %46 : vector<8x1xf32> to vector<8x8xf32>
    %48 = arith.mulf %43, %47 : vector<8x8xf32>
    %49 = arith.truncf %48 : vector<8x8xf32> to vector<8x8xbf16>
    %50 = vector.extract_strided_slice %32 {offsets = [0, 0], sizes = [8, 8], strides = [1, 1]} : vector<8x32xbf16> to vector<8x8xbf16>
    %cst_21 = arith.constant dense<0.000000e+00> : vector<8x8xf32>
    %51 = tpu.matmul %49, %50, %cst_21 {dimension_numbers = #tpu.dot_dimension_numbers<[1], [0], [0], [1], [0, 0, 1, 1], [], []>} : vector<8x8xbf16>, vector<8x8xbf16>, vector<8x8xf32> -> vector<8x8xf32>
    %c0_22 = arith.constant 0 : index
    %c0_23 = arith.constant 0 : index
    %52 = vector.load %arg17[%c0_22, %c0_23] : memref<8x32xf32, #tpu.memory_space<vmem>>, vector<8x8xf32>
    tpu.vector_store %arg17[%c0_22, %c0_23], %51 {strides = array<i32>} : memref<8x32xf32, #tpu.memory_space<vmem>>, vector<8x8xf32>,
    %53 = vector.extract_strided_slice %30 {offsets = [0, 8], sizes = [8, 8], strides = [1, 1]} : vector<8x32xbf16> to vector<8x8xbf16>
    %54 = vector.extract_strided_slice %31 {offsets = [0, 8], sizes = [8, 8], strides = [1, 1]} : vector<8x32xbf16> to vector<8x8xbf16>
    %cst_24 = arith.constant dense<0.000000e+00> : vector<8x8xf32>
    %55 = tpu.matmul %53, %54, %cst_24 {dimension_numbers = #tpu.dot_dimension_numbers<[1], [1], [0], [0], [0, 0, 1, 0], [], []>} : vector<8x8xbf16>, vector<8x8xbf16>, vector<8x8xf32> -> vector<8x8xf32>
    %cst_25 = arith.constant 0.353553385 : f32
    %56 = vector.broadcast %cst_25 : f32 to vector<8x8xf32>
    %57 = arith.mulf %55, %56 : vector<8x8xf32>
    %58 = arith.addf %57, %11 : vector<8x8xf32>
    %cst_26 = arith.constant dense<0xFF800000> : vector<8xf32>
    %59 = vector.multi_reduction <maximumf>, %58, %cst_26 [1] : vector<8x8xf32> to vector<8xf32>
    %60 = vector.shape_cast %59 : vector<8xf32> to vector<8x1xf32>
    %61 = vector.broadcast %60 : vector<8x1xf32> to vector<8x8xf32>
    %62 = arith.subf %58, %61 : vector<8x8xf32>
    %63 = math.exp %62 : vector<8x8xf32>
    %cst_27 = arith.constant dense<0.000000e+00> : vector<8xf32>
    %64 = vector.multi_reduction <add>, %63, %cst_27 [1] : vector<8x8xf32> to vector<8xf32>
    %65 = vector.shape_cast %64 : vector<8xf32> to vector<8x1xf32>
    %66 = tpu.reciprocal %65 {approx = true} : vector<8x1xf32> -> vector<8x1xf32>
    %67 = vector.broadcast %66 : vector<8x1xf32> to vector<8x8xf32>
    %68 = arith.mulf %63, %67 : vector<8x8xf32>
    %69 = arith.truncf %68 : vector<8x8xf32> to vector<8x8xbf16>
    %70 = vector.extract_strided_slice %32 {offsets = [0, 8], sizes = [8, 8], strides = [1, 1]} : vector<8x32xbf16> to vector<8x8xbf16>
    %cst_28 = arith.constant dense<0.000000e+00> : vector<8x8xf32>
    %71 = tpu.matmul %69, %70, %cst_28 {dimension_numbers = #tpu.dot_dimension_numbers<[1], [0], [0], [1], [0, 0, 1, 1], [], []>} : vector<8x8xbf16>, vector<8x8xbf16>, vector<8x8xf32> -> vector<8x8xf32>
    %c0_29 = arith.constant 0 : index
    %c8 = arith.constant 8 : index
    %72 = vector.load %arg17[%c0_29, %c8] : memref<8x32xf32, #tpu.memory_space<vmem>>, vector<8x8xf32>
    tpu.vector_store %arg17[%c0_29, %c8], %71 {strides = array<i32>} : memref<8x32xf32, #tpu.memory_space<vmem>>, vector<8x8xf32>,
    %73 = vector.extract_strided_slice %30 {offsets = [0, 16], sizes = [8, 8], strides = [1, 1]} : vector<8x32xbf16> to vector<8x8xbf16>
    %74 = vector.extract_strided_slice %31 {offsets = [0, 16], sizes = [8, 8], strides = [1, 1]} : vector<8x32xbf16> to vector<8x8xbf16>
    %cst_30 = arith.constant dense<0.000000e+00> : vector<8x8xf32>
    %75 = tpu.matmul %73, %74, %cst_30 {dimension_numbers = #tpu.dot_dimension_numbers<[1], [1], [0], [0], [0, 0, 1, 0], [], []>} : vector<8x8xbf16>, vector<8x8xbf16>, vector<8x8xf32> -> vector<8x8xf32>
    %cst_31 = arith.constant 0.353553385 : f32
    %76 = vector.broadcast %cst_31 : f32 to vector<8x8xf32>
    %77 = arith.mulf %75, %76 : vector<8x8xf32>
    %78 = arith.addf %77, %11 : vector<8x8xf32>
    %cst_32 = arith.constant dense<0xFF800000> : vector<8xf32>
    %79 = vector.multi_reduction <maximumf>, %78, %cst_32 [1] : vector<8x8xf32> to vector<8xf32>
    %80 = vector.shape_cast %79 : vector<8xf32> to vector<8x1xf32>
    %81 = vector.broadcast %80 : vector<8x1xf32> to vector<8x8xf32>
    %82 = arith.subf %78, %81 : vector<8x8xf32>
    %83 = math.exp %82 : vector<8x8xf32>
    %cst_33 = arith.constant dense<0.000000e+00> : vector<8xf32>
    %84 = vector.multi_reduction <add>, %83, %cst_33 [1] : vector<8x8xf32> to vector<8xf32>
    %85 = vector.shape_cast %84 : vector<8xf32> to vector<8x1xf32>
    %86 = tpu.reciprocal %85 {approx = true} : vector<8x1xf32> -> vector<8x1xf32>
    %87 = vector.broadcast %86 : vector<8x1xf32> to vector<8x8xf32>
    %88 = arith.mulf %83, %87 : vector<8x8xf32>
    %89 = arith.truncf %88 : vector<8x8xf32> to vector<8x8xbf16>
    %90 = vector.extract_strided_slice %32 {offsets = [0, 16], sizes = [8, 8], strides = [1, 1]} : vector<8x32xbf16> to vector<8x8xbf16>
    %cst_34 = arith.constant dense<0.000000e+00> : vector<8x8xf32>
    %91 = tpu.matmul %89, %90, %cst_34 {dimension_numbers = #tpu.dot_dimension_numbers<[1], [0], [0], [1], [0, 0, 1, 1], [], []>} : vector<8x8xbf16>, vector<8x8xbf16>, vector<8x8xf32> -> vector<8x8xf32>
    %c0_35 = arith.constant 0 : index
    %c16 = arith.constant 16 : index
    %92 = vector.load %arg17[%c0_35, %c16] : memref<8x32xf32, #tpu.memory_space<vmem>>, vector<8x8xf32>
    tpu.vector_store %arg17[%c0_35, %c16], %91 {strides = array<i32>} : memref<8x32xf32, #tpu.memory_space<vmem>>, vector<8x8xf32>,
    %93 = vector.extract_strided_slice %30 {offsets = [0, 24], sizes = [8, 8], strides = [1, 1]} : vector<8x32xbf16> to vector<8x8xbf16>
    %94 = vector.extract_strided_slice %31 {offsets = [0, 24], sizes = [8, 8], strides = [1, 1]} : vector<8x32xbf16> to vector<8x8xbf16>
    %cst_36 = arith.constant dense<0.000000e+00> : vector<8x8xf32>
    %95 = tpu.matmul %93, %94, %cst_36 {dimension_numbers = #tpu.dot_dimension_numbers<[1], [1], [0], [0], [0, 0, 1, 0], [], []>} : vector<8x8xbf16>, vector<8x8xbf16>, vector<8x8xf32> -> vector<8x8xf32>
    %cst_37 = arith.constant 0.353553385 : f32
    %96 = vector.broadcast %cst_37 : f32 to vector<8x8xf32>
    %97 = arith.mulf %95, %96 : vector<8x8xf32>
    %98 = arith.addf %97, %11 : vector<8x8xf32>
    %cst_38 = arith.constant dense<0xFF800000> : vector<8xf32>
    %99 = vector.multi_reduction <maximumf>, %98, %cst_38 [1] : vector<8x8xf32> to vector<8xf32>
    %100 = vector.shape_cast %99 : vector<8xf32> to vector<8x1xf32>
    %101 = vector.broadcast %100 : vector<8x1xf32> to vector<8x8xf32>
    %102 = arith.subf %98, %101 : vector<8x8xf32>
    %103 = math.exp %102 : vector<8x8xf32>
    %cst_39 = arith.constant dense<0.000000e+00> : vector<8xf32>
    %104 = vector.multi_reduction <add>, %103, %cst_39 [1] : vector<8x8xf32> to vector<8xf32>
    %105 = vector.shape_cast %104 : vector<8xf32> to vector<8x1xf32>
    %106 = tpu.reciprocal %105 {approx = true} : vector<8x1xf32> -> vector<8x1xf32>
    %107 = vector.broadcast %106 : vector<8x1xf32> to vector<8x8xf32>
    %108 = arith.mulf %103, %107 : vector<8x8xf32>
    %109 = arith.truncf %108 : vector<8x8xf32> to vector<8x8xbf16>
    %110 = vector.extract_strided_slice %32 {offsets = [0, 24], sizes = [8, 8], strides = [1, 1]} : vector<8x32xbf16> to vector<8x8xbf16>
    %cst_40 = arith.constant dense<0.000000e+00> : vector<8x8xf32>
    %111 = tpu.matmul %109, %110, %cst_40 {dimension_numbers = #tpu.dot_dimension_numbers<[1], [0], [0], [1], [0, 0, 1, 1], [], []>} : vector<8x8xbf16>, vector<8x8xbf16>, vector<8x8xf32> -> vector<8x8xf32>
    %c0_41 = arith.constant 0 : index
    %c24 = arith.constant 24 : index
    %112 = vector.load %arg17[%c0_41, %c24] : memref<8x32xf32, #tpu.memory_space<vmem>>, vector<8x8xf32>
    tpu.vector_store %arg17[%c0_41, %c24], %111 {strides = array<i32>} : memref<8x32xf32, #tpu.memory_space<vmem>>, vector<8x8xf32>,
    %c0_42 = arith.constant 0 : index
    %c0_43 = arith.constant 0 : index
    %113 = vector.load %arg17[%c0_42, %c0_43] : memref<8x32xf32, #tpu.memory_space<vmem>>, vector<8x32xf32>
    %114 = arith.truncf %113 : vector<8x32xf32> to vector<8x32xbf16>
    %c0_44 = arith.constant 0 : index
    %c0_45 = arith.constant 0 : index
    %c0_46 = arith.constant 0 : index
    %115 = vector.load %arg7[%c0_44, %c0_45, %c0_46] : memref<1x32x32xbf16, #tpu.memory_space<vmem>>, vector<1x32x32xbf16>
    %116 = vector.shape_cast %115 : vector<1x32x32xbf16> to vector<32x32xbf16>
    %cst_47 = arith.constant dense<0.000000e+00> : vector<8x32xf32>
    %117 = tpu.matmul %114, %116, %cst_47 {dimension_numbers = #tpu.dot_dimension_numbers<[1], [0], [0], [1], [0, 0, 1, 1], [], []>} : vector<8x32xbf16>, vector<32x32xbf16>, vector<8x32xf32> -> vector<8x32xf32>
    %118 = vector.extract_strided_slice %9 {offsets = [3, 0], sizes = [1, 32], strides = [1, 1]} : vector<16x32xf32> to vector<1x32xf32>
    %119 = vector.broadcast %118 : vector<1x32xf32> to vector<8x32xf32>
    %120 = arith.addf %117, %119 : vector<8x32xf32>
    %121 = arith.addf %120, %5 : vector<8x32xf32>
    %122 = vector.extract_strided_slice %9 {offsets = [8, 0], sizes = [1, 32], strides = [1, 1]} : vector<16x32xf32> to vector<1x32xf32>
    %123 = vector.extract_strided_slice %9 {offsets = [9, 0], sizes = [1, 32], strides = [1, 1]} : vector<16x32xf32> to vector<1x32xf32>
    %cst_48 = arith.constant dense<0.000000e+00> : vector<8xf32>
    %124 = vector.multi_reduction <add>, %121, %cst_48 [1] : vector<8x32xf32> to vector<8xf32>
    %125 = vector.shape_cast %124 : vector<8xf32> to vector<8x1xf32>
    %cst_49 = arith.constant 3.200000e+01 : f32
    %126 = vector.broadcast %cst_49 : f32 to vector<8x1xf32>
    %127 = arith.divf %125, %126 : vector<8x1xf32>
    %128 = vector.broadcast %127 : vector<8x1xf32> to vector<8x32xf32>
    %129 = arith.subf %121, %128 : vector<8x32xf32>
    %130 = arith.mulf %129, %129 : vector<8x32xf32>
    %cst_50 = arith.constant dense<0.000000e+00> : vector<8xf32>
    %131 = vector.multi_reduction <add>, %130, %cst_50 [1] : vector<8x32xf32> to vector<8xf32>
    %132 = vector.shape_cast %131 : vector<8xf32> to vector<8x1xf32>
    %cst_51 = arith.constant 3.200000e+01 : f32
    %133 = vector.broadcast %cst_51 : f32 to vector<8x1xf32>
    %134 = arith.divf %132, %133 : vector<8x1xf32>
    %135 = vector.broadcast %127 : vector<8x1xf32> to vector<8x32xf32>
    %136 = arith.subf %121, %135 : vector<8x32xf32>
    %cst_52 = arith.constant 9.99999997E-7 : f32
    %137 = vector.broadcast %cst_52 : f32 to vector<8x1xf32>
    %138 = arith.addf %134, %137 : vector<8x1xf32>
    %139 = math.rsqrt %138 : vector<8x1xf32>
    %140 = vector.broadcast %139 : vector<8x1xf32> to vector<8x32xf32>
    %141 = arith.mulf %136, %140 : vector<8x32xf32>
    %142 = vector.broadcast %122 : vector<1x32xf32> to vector<8x32xf32>
    %143 = arith.mulf %141, %142 : vector<8x32xf32>
    %144 = vector.broadcast %123 : vector<1x32xf32> to vector<8x32xf32>
    %145 = arith.addf %143, %144 : vector<8x32xf32>
    %146 = arith.truncf %145 : vector<8x32xf32> to vector<8x32xbf16>
    %c0_53 = arith.constant 0 : index
    %c0_54 = arith.constant 0 : index
    %c0_55 = arith.constant 0 : index
    %147 = vector.load %arg8[%c0_53, %c0_54, %c0_55] : memref<1x32x32xbf16, #tpu.memory_space<vmem>>, vector<1x32x32xbf16>
    %148 = vector.shape_cast %147 : vector<1x32x32xbf16> to vector<32x32xbf16>
    %cst_56 = arith.constant dense<0.000000e+00> : vector<8x32xf32>
    %149 = tpu.matmul %146, %148, %cst_56 {dimension_numbers = #tpu.dot_dimension_numbers<[1], [0], [0], [1], [0, 0, 1, 1], [], []>} : vector<8x32xbf16>, vector<32x32xbf16>, vector<8x32xf32> -> vector<8x32xf32>
    %150 = vector.extract_strided_slice %9 {offsets = [4, 0], sizes = [1, 32], strides = [1, 1]} : vector<16x32xf32> to vector<1x32xf32>
    %151 = vector.broadcast %150 : vector<1x32xf32> to vector<8x32xf32>
    %152 = arith.addf %149, %151 : vector<8x32xf32>
    %153 = arith.truncf %7 : vector<8x32xf32> to vector<8x32xbf16>
    %c0_57 = arith.constant 0 : index
    %c0_58 = arith.constant 0 : index
    %c0_59 = arith.constant 0 : index
    %154 = vector.load %arg9[%c0_57, %c0_58, %c0_59] : memref<1x32x64xbf16, #tpu.memory_space<vmem>>, vector<1x32x64xbf16>
    %155 = vector.shape_cast %154 : vector<1x32x64xbf16> to vector<32x64xbf16>
    %cst_60 = arith.constant dense<0.000000e+00> : vector<8x64xf32>
    %156 = tpu.matmul %153, %155, %cst_60 {dimension_numbers = #tpu.dot_dimension_numbers<[1], [0], [0], [1], [0, 0, 1, 1], [], []>} : vector<8x32xbf16>, vector<32x64xbf16>, vector<8x64xf32> -> vector<8x64xf32>
    %157 = vector.extract_strided_slice %156 {offsets = [0, 0], sizes = [8, 32], strides = [1, 1]} : vector<8x64xf32> to vector<8x32xf32>
    %158 = vector.extract_strided_slice %9 {offsets = [5, 0], sizes = [1, 32], strides = [1, 1]} : vector<16x32xf32> to vector<1x32xf32>
    %159 = vector.broadcast %158 : vector<1x32xf32> to vector<8x32xf32>
    %160 = arith.addf %157, %159 : vector<8x32xf32>
    %161 = vector.extract_strided_slice %156 {offsets = [0, 32], sizes = [8, 32], strides = [1, 1]} : vector<8x64xf32> to vector<8x32xf32>
    %162 = vector.extract_strided_slice %9 {offsets = [6, 0], sizes = [1, 32], strides = [1, 1]} : vector<16x32xf32> to vector<1x32xf32>
    %163 = vector.broadcast %162 : vector<1x32xf32> to vector<8x32xf32>
    %164 = arith.addf %161, %163 : vector<8x32xf32>
    %165 = arith.truncf %152 : vector<8x32xf32> to vector<8x32xbf16>
    %166 = arith.truncf %160 : vector<8x32xf32> to vector<8x32xbf16>
    %167 = arith.truncf %164 : vector<8x32xf32> to vector<8x32xbf16>
    %168 = vector.extract_strided_slice %165 {offsets = [0, 0], sizes = [8, 8], strides = [1, 1]} : vector<8x32xbf16> to vector<8x8xbf16>
    %169 = vector.extract_strided_slice %166 {offsets = [0, 0], sizes = [8, 8], strides = [1, 1]} : vector<8x32xbf16> to vector<8x8xbf16>
    %cst_61 = arith.constant dense<0.000000e+00> : vector<8x8xf32>
    %170 = tpu.matmul %168, %169, %cst_61 {dimension_numbers = #tpu.dot_dimension_numbers<[1], [1], [0], [0], [0, 0, 1, 0], [], []>} : vector<8x8xbf16>, vector<8x8xbf16>, vector<8x8xf32> -> vector<8x8xf32>
    %cst_62 = arith.constant 0.353553385 : f32
    %171 = vector.broadcast %cst_62 : f32 to vector<8x8xf32>
    %172 = arith.mulf %170, %171 : vector<8x8xf32>
    %173 = arith.addf %172, %13 : vector<8x8xf32>
    %cst_63 = arith.constant dense<0xFF800000> : vector<8xf32>
    %174 = vector.multi_reduction <maximumf>, %173, %cst_63 [1] : vector<8x8xf32> to vector<8xf32>
    %175 = vector.shape_cast %174 : vector<8xf32> to vector<8x1xf32>
    %176 = vector.broadcast %175 : vector<8x1xf32> to vector<8x8xf32>
    %177 = arith.subf %173, %176 : vector<8x8xf32>
    %178 = math.exp %177 : vector<8x8xf32>
    %cst_64 = arith.constant dense<0.000000e+00> : vector<8xf32>
    %179 = vector.multi_reduction <add>, %178, %cst_64 [1] : vector<8x8xf32> to vector<8xf32>
    %180 = vector.shape_cast %179 : vector<8xf32> to vector<8x1xf32>
    %181 = tpu.reciprocal %180 {approx = true} : vector<8x1xf32> -> vector<8x1xf32>
    %182 = vector.broadcast %181 : vector<8x1xf32> to vector<8x8xf32>
    %183 = arith.mulf %178, %182 : vector<8x8xf32>
    %184 = arith.truncf %183 : vector<8x8xf32> to vector<8x8xbf16>
    %185 = vector.extract_strided_slice %167 {offsets = [0, 0], sizes = [8, 8], strides = [1, 1]} : vector<8x32xbf16> to vector<8x8xbf16>
    %cst_65 = arith.constant dense<0.000000e+00> : vector<8x8xf32>
    %186 = tpu.matmul %184, %185, %cst_65 {dimension_numbers = #tpu.dot_dimension_numbers<[1], [0], [0], [1], [0, 0, 1, 1], [], []>} : vector<8x8xbf16>, vector<8x8xbf16>, vector<8x8xf32> -> vector<8x8xf32>
    %c0_66 = arith.constant 0 : index
    %c0_67 = arith.constant 0 : index
    %187 = vector.load %arg17[%c0_66, %c0_67] : memref<8x32xf32, #tpu.memory_space<vmem>>, vector<8x8xf32>
    tpu.vector_store %arg17[%c0_66, %c0_67], %186 {strides = array<i32>} : memref<8x32xf32, #tpu.memory_space<vmem>>, vector<8x8xf32>,
    %188 = vector.extract_strided_slice %165 {offsets = [0, 8], sizes = [8, 8], strides = [1, 1]} : vector<8x32xbf16> to vector<8x8xbf16>
    %189 = vector.extract_strided_slice %166 {offsets = [0, 8], sizes = [8, 8], strides = [1, 1]} : vector<8x32xbf16> to vector<8x8xbf16>
    %cst_68 = arith.constant dense<0.000000e+00> : vector<8x8xf32>
    %190 = tpu.matmul %188, %189, %cst_68 {dimension_numbers = #tpu.dot_dimension_numbers<[1], [1], [0], [0], [0, 0, 1, 0], [], []>} : vector<8x8xbf16>, vector<8x8xbf16>, vector<8x8xf32> -> vector<8x8xf32>
    %cst_69 = arith.constant 0.353553385 : f32
    %191 = vector.broadcast %cst_69 : f32 to vector<8x8xf32>
    %192 = arith.mulf %190, %191 : vector<8x8xf32>
    %193 = arith.addf %192, %13 : vector<8x8xf32>
    %cst_70 = arith.constant dense<0xFF800000> : vector<8xf32>
    %194 = vector.multi_reduction <maximumf>, %193, %cst_70 [1] : vector<8x8xf32> to vector<8xf32>
    %195 = vector.shape_cast %194 : vector<8xf32> to vector<8x1xf32>
    %196 = vector.broadcast %195 : vector<8x1xf32> to vector<8x8xf32>
    %197 = arith.subf %193, %196 : vector<8x8xf32>
    %198 = math.exp %197 : vector<8x8xf32>
    %cst_71 = arith.constant dense<0.000000e+00> : vector<8xf32>
    %199 = vector.multi_reduction <add>, %198, %cst_71 [1] : vector<8x8xf32> to vector<8xf32>
    %200 = vector.shape_cast %199 : vector<8xf32> to vector<8x1xf32>
    %201 = tpu.reciprocal %200 {approx = true} : vector<8x1xf32> -> vector<8x1xf32>
    %202 = vector.broadcast %201 : vector<8x1xf32> to vector<8x8xf32>
    %203 = arith.mulf %198, %202 : vector<8x8xf32>
    %204 = arith.truncf %203 : vector<8x8xf32> to vector<8x8xbf16>
    %205 = vector.extract_strided_slice %167 {offsets = [0, 8], sizes = [8, 8], strides = [1, 1]} : vector<8x32xbf16> to vector<8x8xbf16>
    %cst_72 = arith.constant dense<0.000000e+00> : vector<8x8xf32>
    %206 = tpu.matmul %204, %205, %cst_72 {dimension_numbers = #tpu.dot_dimension_numbers<[1], [0], [0], [1], [0, 0, 1, 1], [], []>} : vector<8x8xbf16>, vector<8x8xbf16>, vector<8x8xf32> -> vector<8x8xf32>
    %c0_73 = arith.constant 0 : index
    %c8_74 = arith.constant 8 : index
    %207 = vector.load %arg17[%c0_73, %c8_74] : memref<8x32xf32, #tpu.memory_space<vmem>>, vector<8x8xf32>
    tpu.vector_store %arg17[%c0_73, %c8_74], %206 {strides = array<i32>} : memref<8x32xf32, #tpu.memory_space<vmem>>, vector<8x8xf32>,
    %208 = vector.extract_strided_slice %165 {offsets = [0, 16], sizes = [8, 8], strides = [1, 1]} : vector<8x32xbf16> to vector<8x8xbf16>
    %209 = vector.extract_strided_slice %166 {offsets = [0, 16], sizes = [8, 8], strides = [1, 1]} : vector<8x32xbf16> to vector<8x8xbf16>
    %cst_75 = arith.constant dense<0.000000e+00> : vector<8x8xf32>
    %210 = tpu.matmul %208, %209, %cst_75 {dimension_numbers = #tpu.dot_dimension_numbers<[1], [1], [0], [0], [0, 0, 1, 0], [], []>} : vector<8x8xbf16>, vector<8x8xbf16>, vector<8x8xf32> -> vector<8x8xf32>
    %cst_76 = arith.constant 0.353553385 : f32
    %211 = vector.broadcast %cst_76 : f32 to vector<8x8xf32>
    %212 = arith.mulf %210, %211 : vector<8x8xf32>
    %213 = arith.addf %212, %13 : vector<8x8xf32>
    %cst_77 = arith.constant dense<0xFF800000> : vector<8xf32>
    %214 = vector.multi_reduction <maximumf>, %213, %cst_77 [1] : vector<8x8xf32> to vector<8xf32>
    %215 = vector.shape_cast %214 : vector<8xf32> to vector<8x1xf32>
    %216 = vector.broadcast %215 : vector<8x1xf32> to vector<8x8xf32>
    %217 = arith.subf %213, %216 : vector<8x8xf32>
    %218 = math.exp %217 : vector<8x8xf32>
    %cst_78 = arith.constant dense<0.000000e+00> : vector<8xf32>
    %219 = vector.multi_reduction <add>, %218, %cst_78 [1] : vector<8x8xf32> to vector<8xf32>
    %220 = vector.shape_cast %219 : vector<8xf32> to vector<8x1xf32>
    %221 = tpu.reciprocal %220 {approx = true} : vector<8x1xf32> -> vector<8x1xf32>
    %222 = vector.broadcast %221 : vector<8x1xf32> to vector<8x8xf32>
    %223 = arith.mulf %218, %222 : vector<8x8xf32>
    %224 = arith.truncf %223 : vector<8x8xf32> to vector<8x8xbf16>
    %225 = vector.extract_strided_slice %167 {offsets = [0, 16], sizes = [8, 8], strides = [1, 1]} : vector<8x32xbf16> to vector<8x8xbf16>
    %cst_79 = arith.constant dense<0.000000e+00> : vector<8x8xf32>
    %226 = tpu.matmul %224, %225, %cst_79 {dimension_numbers = #tpu.dot_dimension_numbers<[1], [0], [0], [1], [0, 0, 1, 1], [], []>} : vector<8x8xbf16>, vector<8x8xbf16>, vector<8x8xf32> -> vector<8x8xf32>
    %c0_80 = arith.constant 0 : index
    %c16_81 = arith.constant 16 : index
    %227 = vector.load %arg17[%c0_80, %c16_81] : memref<8x32xf32, #tpu.memory_space<vmem>>, vector<8x8xf32>
    tpu.vector_store %arg17[%c0_80, %c16_81], %226 {strides = array<i32>} : memref<8x32xf32, #tpu.memory_space<vmem>>, vector<8x8xf32>,
    %228 = vector.extract_strided_slice %165 {offsets = [0, 24], sizes = [8, 8], strides = [1, 1]} : vector<8x32xbf16> to vector<8x8xbf16>
    %229 = vector.extract_strided_slice %166 {offsets = [0, 24], sizes = [8, 8], strides = [1, 1]} : vector<8x32xbf16> to vector<8x8xbf16>
    %cst_82 = arith.constant dense<0.000000e+00> : vector<8x8xf32>
    %230 = tpu.matmul %228, %229, %cst_82 {dimension_numbers = #tpu.dot_dimension_numbers<[1], [1], [0], [0], [0, 0, 1, 0], [], []>} : vector<8x8xbf16>, vector<8x8xbf16>, vector<8x8xf32> -> vector<8x8xf32>
    %cst_83 = arith.constant 0.353553385 : f32
    %231 = vector.broadcast %cst_83 : f32 to vector<8x8xf32>
    %232 = arith.mulf %230, %231 : vector<8x8xf32>
    %233 = arith.addf %232, %13 : vector<8x8xf32>
    %cst_84 = arith.constant dense<0xFF800000> : vector<8xf32>
    %234 = vector.multi_reduction <maximumf>, %233, %cst_84 [1] : vector<8x8xf32> to vector<8xf32>
    %235 = vector.shape_cast %234 : vector<8xf32> to vector<8x1xf32>
    %236 = vector.broadcast %235 : vector<8x1xf32> to vector<8x8xf32>
    %237 = arith.subf %233, %236 : vector<8x8xf32>
    %238 = math.exp %237 : vector<8x8xf32>
    %cst_85 = arith.constant dense<0.000000e+00> : vector<8xf32>
    %239 = vector.multi_reduction <add>, %238, %cst_85 [1] : vector<8x8xf32> to vector<8xf32>
    %240 = vector.shape_cast %239 : vector<8xf32> to vector<8x1xf32>
    %241 = tpu.reciprocal %240 {approx = true} : vector<8x1xf32> -> vector<8x1xf32>
    %242 = vector.broadcast %241 : vector<8x1xf32> to vector<8x8xf32>
    %243 = arith.mulf %238, %242 : vector<8x8xf32>
    %244 = arith.truncf %243 : vector<8x8xf32> to vector<8x8xbf16>
    %245 = vector.extract_strided_slice %167 {offsets = [0, 24], sizes = [8, 8], strides = [1, 1]} : vector<8x32xbf16> to vector<8x8xbf16>
    %cst_86 = arith.constant dense<0.000000e+00> : vector<8x8xf32>
    %246 = tpu.matmul %244, %245, %cst_86 {dimension_numbers = #tpu.dot_dimension_numbers<[1], [0], [0], [1], [0, 0, 1, 1], [], []>} : vector<8x8xbf16>, vector<8x8xbf16>, vector<8x8xf32> -> vector<8x8xf32>
    %c0_87 = arith.constant 0 : index
    %c24_88 = arith.constant 24 : index
    %247 = vector.load %arg17[%c0_87, %c24_88] : memref<8x32xf32, #tpu.memory_space<vmem>>, vector<8x8xf32>
    tpu.vector_store %arg17[%c0_87, %c24_88], %246 {strides = array<i32>} : memref<8x32xf32, #tpu.memory_space<vmem>>, vector<8x8xf32>,
    %c0_89 = arith.constant 0 : index
    %c0_90 = arith.constant 0 : index
    %248 = vector.load %arg17[%c0_89, %c0_90] : memref<8x32xf32, #tpu.memory_space<vmem>>, vector<8x32xf32>
    %249 = arith.truncf %248 : vector<8x32xf32> to vector<8x32xbf16>
    %c0_91 = arith.constant 0 : index
    %c0_92 = arith.constant 0 : index
    %c0_93 = arith.constant 0 : index
    %250 = vector.load %arg10[%c0_91, %c0_92, %c0_93] : memref<1x32x32xbf16, #tpu.memory_space<vmem>>, vector<1x32x32xbf16>
    %251 = vector.shape_cast %250 : vector<1x32x32xbf16> to vector<32x32xbf16>
    %cst_94 = arith.constant dense<0.000000e+00> : vector<8x32xf32>
    %252 = tpu.matmul %249, %251, %cst_94 {dimension_numbers = #tpu.dot_dimension_numbers<[1], [0], [0], [1], [0, 0, 1, 1], [], []>} : vector<8x32xbf16>, vector<32x32xbf16>, vector<8x32xf32> -> vector<8x32xf32>
    %253 = vector.extract_strided_slice %9 {offsets = [7, 0], sizes = [1, 32], strides = [1, 1]} : vector<16x32xf32> to vector<1x32xf32>
    %254 = vector.broadcast %253 : vector<1x32xf32> to vector<8x32xf32>
    %255 = arith.addf %252, %254 : vector<8x32xf32>
    %256 = arith.addf %255, %145 : vector<8x32xf32>
    %257 = vector.extract_strided_slice %9 {offsets = [10, 0], sizes = [1, 32], strides = [1, 1]} : vector<16x32xf32> to vector<1x32xf32>
    %258 = vector.extract_strided_slice %9 {offsets = [11, 0], sizes = [1, 32], strides = [1, 1]} : vector<16x32xf32> to vector<1x32xf32>
    %cst_95 = arith.constant dense<0.000000e+00> : vector<8xf32>
    %259 = vector.multi_reduction <add>, %256, %cst_95 [1] : vector<8x32xf32> to vector<8xf32>
    %260 = vector.shape_cast %259 : vector<8xf32> to vector<8x1xf32>
    %cst_96 = arith.constant 3.200000e+01 : f32
    %261 = vector.broadcast %cst_96 : f32 to vector<8x1xf32>
    %262 = arith.divf %260, %261 : vector<8x1xf32>
    %263 = vector.broadcast %262 : vector<8x1xf32> to vector<8x32xf32>
    %264 = arith.subf %256, %263 : vector<8x32xf32>
    %265 = arith.mulf %264, %264 : vector<8x32xf32>
    %cst_97 = arith.constant dense<0.000000e+00> : vector<8xf32>
    %266 = vector.multi_reduction <add>, %265, %cst_97 [1] : vector<8x32xf32> to vector<8xf32>
    %267 = vector.shape_cast %266 : vector<8xf32> to vector<8x1xf32>
    %cst_98 = arith.constant 3.200000e+01 : f32
    %268 = vector.broadcast %cst_98 : f32 to vector<8x1xf32>
    %269 = arith.divf %267, %268 : vector<8x1xf32>
    %270 = vector.broadcast %262 : vector<8x1xf32> to vector<8x32xf32>
    %271 = arith.subf %256, %270 : vector<8x32xf32>
    %cst_99 = arith.constant 9.99999997E-7 : f32
    %272 = vector.broadcast %cst_99 : f32 to vector<8x1xf32>
    %273 = arith.addf %269, %272 : vector<8x1xf32>
    %274 = math.rsqrt %273 : vector<8x1xf32>
    %275 = vector.broadcast %274 : vector<8x1xf32> to vector<8x32xf32>
    %276 = arith.mulf %271, %275 : vector<8x32xf32>
    %277 = vector.broadcast %257 : vector<1x32xf32> to vector<8x32xf32>
    %278 = arith.mulf %276, %277 : vector<8x32xf32>
    %279 = vector.broadcast %258 : vector<1x32xf32> to vector<8x32xf32>
    %280 = arith.addf %278, %279 : vector<8x32xf32>
    %281 = arith.truncf %280 : vector<8x32xf32> to vector<8x32xbf16>
    %c0_100 = arith.constant 0 : index
    %c0_101 = arith.constant 0 : index
    %c0_102 = arith.constant 0 : index
    %282 = vector.load %arg11[%c0_100, %c0_101, %c0_102] : memref<1x32x64xbf16, #tpu.memory_space<vmem>>, vector<1x32x64xbf16>
    %283 = vector.shape_cast %282 : vector<1x32x64xbf16> to vector<32x64xbf16>
    %cst_103 = arith.constant dense<0.000000e+00> : vector<8x64xf32>
    %284 = tpu.matmul %281, %283, %cst_103 {dimension_numbers = #tpu.dot_dimension_numbers<[1], [0], [0], [1], [0, 0, 1, 1], [], []>} : vector<8x32xbf16>, vector<32x64xbf16>, vector<8x64xf32> -> vector<8x64xf32>
    %c0_104 = arith.constant 0 : index
    %c0_105 = arith.constant 0 : index
    %c0_106 = arith.constant 0 : index
    %285 = vector.load %arg13[%c0_104, %c0_105, %c0_106] : memref<1x1x64xf32, #tpu.memory_space<vmem>>, vector<1x1x64xf32>
    %286 = vector.shape_cast %285 : vector<1x1x64xf32> to vector<1x64xf32>
    %287 = vector.broadcast %286 : vector<1x64xf32> to vector<8x64xf32>
    %288 = arith.addf %284, %287 : vector<8x64xf32>
    %cst_107 = arith.constant 0.000000e+00 : f32
    %289 = vector.broadcast %cst_107 : f32 to vector<8x64xf32>
    %290 = arith.maximumf %288, %289 : vector<8x64xf32>
    %291 = arith.truncf %290 : vector<8x64xf32> to vector<8x64xbf16>
    %c0_108 = arith.constant 0 : index
    %c0_109 = arith.constant 0 : index
    %c0_110 = arith.constant 0 : index
    %292 = vector.load %arg12[%c0_108, %c0_109, %c0_110] : memref<1x64x32xbf16, #tpu.memory_space<vmem>>, vector<1x64x32xbf16>
    %293 = vector.shape_cast %292 : vector<1x64x32xbf16> to vector<64x32xbf16>
    %cst_111 = arith.constant dense<0.000000e+00> : vector<8x32xf32>
    %294 = tpu.matmul %291, %293, %cst_111 {dimension_numbers = #tpu.dot_dimension_numbers<[1], [0], [0], [1], [0, 0, 1, 1], [], []>} : vector<8x64xbf16>, vector<64x32xbf16>, vector<8x32xf32> -> vector<8x32xf32>
    %295 = vector.extract_strided_slice %9 {offsets = [14, 0], sizes = [1, 32], strides = [1, 1]} : vector<16x32xf32> to vector<1x32xf32>
    %296 = vector.broadcast %295 : vector<1x32xf32> to vector<8x32xf32>
    %297 = arith.addf %294, %296 : vector<8x32xf32>
    %298 = arith.addf %297, %280 : vector<8x32xf32>
    %299 = vector.extract_strided_slice %9 {offsets = [12, 0], sizes = [1, 32], strides = [1, 1]} : vector<16x32xf32> to vector<1x32xf32>
    %300 = vector.extract_strided_slice %9 {offsets = [13, 0], sizes = [1, 32], strides = [1, 1]} : vector<16x32xf32> to vector<1x32xf32>
    %cst_112 = arith.constant dense<0.000000e+00> : vector<8xf32>
    %301 = vector.multi_reduction <add>, %298, %cst_112 [1] : vector<8x32xf32> to vector<8xf32>
    %302 = vector.shape_cast %301 : vector<8xf32> to vector<8x1xf32>
    %cst_113 = arith.constant 3.200000e+01 : f32
    %303 = vector.broadcast %cst_113 : f32 to vector<8x1xf32>
    %304 = arith.divf %302, %303 : vector<8x1xf32>
    %305 = vector.broadcast %304 : vector<8x1xf32> to vector<8x32xf32>
    %306 = arith.subf %298, %305 : vector<8x32xf32>
    %307 = arith.mulf %306, %306 : vector<8x32xf32>
    %cst_114 = arith.constant dense<0.000000e+00> : vector<8xf32>
    %308 = vector.multi_reduction <add>, %307, %cst_114 [1] : vector<8x32xf32> to vector<8xf32>
    %309 = vector.shape_cast %308 : vector<8xf32> to vector<8x1xf32>
    %cst_115 = arith.constant 3.200000e+01 : f32
    %310 = vector.broadcast %cst_115 : f32 to vector<8x1xf32>
    %311 = arith.divf %309, %310 : vector<8x1xf32>
    %312 = vector.broadcast %304 : vector<8x1xf32> to vector<8x32xf32>
    %313 = arith.subf %298, %312 : vector<8x32xf32>
    %cst_116 = arith.constant 9.99999997E-7 : f32
    %314 = vector.broadcast %cst_116 : f32 to vector<8x1xf32>
    %315 = arith.addf %311, %314 : vector<8x1xf32>
    %316 = math.rsqrt %315 : vector<8x1xf32>
    %317 = vector.broadcast %316 : vector<8x1xf32> to vector<8x32xf32>
    %318 = arith.mulf %313, %317 : vector<8x32xf32>
    %319 = vector.broadcast %299 : vector<1x32xf32> to vector<8x32xf32>
    %320 = arith.mulf %318, %319 : vector<8x32xf32>
    %321 = vector.broadcast %300 : vector<1x32xf32> to vector<8x32xf32>
    %322 = arith.addf %320, %321 : vector<8x32xf32>
    %323 = arith.index_cast %arg1 : i32 to index
    %c0_117 = arith.constant 0 : index
    %c0_118 = arith.constant 0 : index
    %324 = vector.load %arg16[%323, %c0_117, %c0_118] : memref<2x8x32xf32, #tpu.memory_space<vmem>>, vector<1x8x32xf32>
    %325 = vector.shape_cast %324 : vector<1x8x32xf32> to vector<8x32xf32>
    %326 = vector.shape_cast %322 : vector<8x32xf32> to vector<1x8x32xf32>
    tpu.vector_store %arg16[%323, %c0_117, %c0_118], %326 {strides = array<i32>} : memref<2x8x32xf32, #tpu.memory_space<vmem>>, vector<1x8x32xf32>,
    %c1_i32 = arith.constant 1 : i32
    %327 = arith.cmpi eq, %arg0, %c1_i32 : i32
    %328 = arith.extui %327 : i1 to i32
    %c0_i32_119 = arith.constant 0 : i32
    %329 = arith.cmpi ne, %328, %c0_i32_119 : i32
    scf.if %329 {
      %c0_120 = arith.constant 0 : index
      %c0_121 = arith.constant 0 : index
      %c0_122 = arith.constant 0 : index
      %330 = vector.load %arg15[%c0_120, %c0_121, %c0_122] : memref<1x8x32xf32, #tpu.memory_space<vmem>>, vector<1x8x32xf32>
      %331 = vector.shape_cast %330 : vector<1x8x32xf32> to vector<8x32xf32>
      %332 = vector.shape_cast %322 : vector<8x32xf32> to vector<1x8x32xf32>
      tpu.vector_store %arg15[%c0_120, %c0_121, %c0_122], %332 {strides = array<i32>} : memref<1x8x32xf32, #tpu.memory_space<vmem>>, vector<1x8x32xf32>,
    } else {
    }
    return
  }
  func.func @transform_0(%arg0: i32, %arg1: i32) -> (i32, i32, i32) {
    %c0_i32 = arith.constant 0 : i32
    %c0_i32_0 = arith.constant 0 : i32
    %c0_i32_1 = arith.constant 0 : i32
    return %arg1, %c0_i32, %c0_i32_0 : i32, i32, i32
  }
  func.func @transform_1(%arg0: i32, %arg1: i32) -> (i32, i32, i32) {
    %c0_i32 = arith.constant 0 : i32
    %c0_i32_0 = arith.constant 0 : i32
    %c0_i32_1 = arith.constant 0 : i32
    return %arg1, %c0_i32, %c0_i32_0 : i32, i32, i32
  }
  func.func @transform_2(%arg0: i32, %arg1: i32) -> (i32, i32, i32) {
    %c0_i32 = arith.constant 0 : i32
    %c0_i32_0 = arith.constant 0 : i32
    %c0_i32_1 = arith.constant 0 : i32
    return %arg1, %c0_i32, %c0_i32_0 : i32, i32, i32
  }
  func.func @transform_3(%arg0: i32, %arg1: i32) -> (i32, i32, i32) {
    %c0_i32 = arith.constant 0 : i32
    %c0_i32_0 = arith.constant 0 : i32
    %c0_i32_1 = arith.constant 0 : i32
    return %arg1, %c0_i32, %c0_i32_0 : i32, i32, i32
  }
  func.func @transform_4(%arg0: i32, %arg1: i32) -> (i32, i32, i32) {
    %c0_i32 = arith.constant 0 : i32
    %c0_i32_0 = arith.constant 0 : i32
    %c0_i32_1 = arith.constant 0 : i32
    return %arg0, %c0_i32, %c0_i32_0 : i32, i32, i32
  }
  func.func @transform_5(%arg0: i32, %arg1: i32) -> (i32, i32, i32) {
    %c0_i32 = arith.constant 0 : i32
    %c0_i32_0 = arith.constant 0 : i32
    %c0_i32_1 = arith.constant 0 : i32
    return %arg0, %c0_i32, %c0_i32_0 : i32, i32, i32
  }
  func.func @transform_6(%arg0: i32, %arg1: i32) -> (i32, i32, i32) {
    %c0_i32 = arith.constant 0 : i32
    %c0_i32_0 = arith.constant 0 : i32
    %c0_i32_1 = arith.constant 0 : i32
    return %arg0, %c0_i32, %c0_i32_0 : i32, i32, i32
  }
  func.func @transform_7(%arg0: i32, %arg1: i32) -> (i32, i32, i32) {
    %c0_i32 = arith.constant 0 : i32
    %c0_i32_0 = arith.constant 0 : i32
    %c0_i32_1 = arith.constant 0 : i32
    return %arg0, %c0_i32, %c0_i32_0 : i32, i32, i32
  }
  func.func @transform_8(%arg0: i32, %arg1: i32) -> (i32, i32, i32) {
    %c0_i32 = arith.constant 0 : i32
    %c0_i32_0 = arith.constant 0 : i32
    %c0_i32_1 = arith.constant 0 : i32
    return %arg0, %c0_i32, %c0_i32_0 : i32, i32, i32
  }
  func.func @transform_9(%arg0: i32, %arg1: i32) -> (i32, i32, i32) {
    %c0_i32 = arith.constant 0 : i32
    %c0_i32_0 = arith.constant 0 : i32
    %c0_i32_1 = arith.constant 0 : i32
    return %arg0, %c0_i32, %c0_i32_0 : i32, i32, i32
  }
  func.func @transform_10(%arg0: i32, %arg1: i32) -> (i32, i32, i32) {
    %c0_i32 = arith.constant 0 : i32
    %c0_i32_0 = arith.constant 0 : i32
    %c0_i32_1 = arith.constant 0 : i32
    return %arg0, %c0_i32, %c0_i32_0 : i32, i32, i32
  }
  func.func @transform_11(%arg0: i32, %arg1: i32) -> (i32, i32, i32) {
    %c0_i32 = arith.constant 0 : i32
    %c0_i32_0 = arith.constant 0 : i32
    %c0_i32_1 = arith.constant 0 : i32
    return %arg0, %c0_i32, %c0_i32_0 : i32, i32, i32
  }
  func.func @transform_12(%arg0: i32, %arg1: i32) -> (i32, i32, i32) {
    %c0_i32 = arith.constant 0 : i32
    %c0_i32_0 = arith.constant 0 : i32
    %c0_i32_1 = arith.constant 0 : i32
    return %arg0, %c0_i32, %c0_i32_0 : i32, i32, i32
  }
  func.func @transform_13(%arg0: i32, %arg1: i32) -> (i32, i32, i32) {
    %c0_i32 = arith.constant 0 : i32
    %c0_i32_0 = arith.constant 0 : i32
    %c0_i32_1 = arith.constant 0 : i32
    return %arg1, %c0_i32, %c0_i32_0 : i32, i32, i32
  }
}

</mosaic_0001>

<bundles_post_ra>
// kernel: tpu_custom_call.1
= control target key start
LH: loop header
LB: loop body
LE: loop exit
PB: predicated region body
PF: predicated region fallthrough
CT: control target
= control target key end

     0   :  { %s4557_s0 = inlined_call_operand.hbm [shape: f32[2,8,32], index: 0, kind: input, shape index: {}]   ;;  %s4558_s1 = inlined_call_operand.hbm [shape: f32[2,8,32], index: 1, kind: input, shape index: {}]   ;;  %s4559_s2 = inlined_call_operand.hbm [shape: f32[2,8,8], index: 2, kind: input, shape index: {}]   ;;  %s4560_s3 = inlined_call_operand.hbm [shape: f32[2,8,8], index: 3, kind: input, shape index: {}]   ;;  %s4561_s4 = inlined_call_operand.vmem [shape: bf16[2,32,96], index: 4, kind: input, shape index: {}]   ;;  %s4562_s5 = inlined_call_operand.vmem [shape: bf16[2,32,32], index: 5, kind: input, shape index: {}]   ;;  %s4563_s6 = inlined_call_operand.vmem [shape: bf16[2,32,32], index: 6, kind: input, shape index: {}]   ;;  %s4564_s7 = inlined_call_operand.hbm [shape: bf16[2,32,64], index: 7, kind: input, shape index: {}]   ;;  %s4565_s8 = inlined_call_operand.hbm [shape: bf16[2,32,32], index: 8, kind: input, shape index: {}]   ;;  %s4566_s9 = inlined_call_operand.hbm [shape: bf16[2,32,64], index: 9, kind: input, shape index: {}]   ;;  %s4567_s10 = inlined_call_operand.vmem [shape: bf16[2,64,32], index: 10, kind: input, shape index: {}]   ;;  %s4568_s11 = inlined_call_operand.vmem [shape: f32[2,1,64], index: 11, kind: input, shape index: {}]   ;;  %s4569_s12 = inlined_call_operand.hbm [shape: f32[2,16,32], index: 12, kind: input, shape index: {}]   ;;  %s4570_s13 = inlined_call_operand.hbm [shape: f32[2,8,32], index: 13, kind: output, shape index: {}]  }
   0x1   :  { %4610 = sst [smem:[#allocation43_spill]] %s4557_s0 }
   0x2   :  { %4611 = sst [smem:[#allocation44_spill]] %s4558_s1 }
   0x3   :  { %4612 = sst [smem:[#allocation45_spill]] %s4559_s2 }
   0x4   :  { %4613 = sst [smem:[#allocation46_spill]] %s4560_s3 }
   0x5   :  { %4614 = sst [smem:[#allocation47_spill]] %s4561_s4 }
   0x6   :  { %4615 = sst [smem:[#allocation48_spill]] %s4562_s5 }
   0x7   :  { %4616 = sst [smem:[#allocation49_spill]] %s4563_s6 }
   0x8   :  { %4617 = sst [smem:[#allocation50_spill]] %s4564_s7 }
   0x9   :  { %4618 = sst [smem:[#allocation51_spill]] %s4565_s8 }
   0xa   :  { %4619 = sst [smem:[#allocation52_spill]] %s4567_s10 }
   0xb   :  { %4620 = sst [smem:[#allocation53_spill]] %s4568_s11 }
   0xc   :  { %4621 = sst [smem:[#allocation54_spill]] %s4570_s13 }
   0xd   :  { %18 = vsyncpa [#allocation5], 0 }
   0xe   :  { %20 = vsyncpa [#allocation5 + $0x1], 0 }
   0xf   :  { %21 = vsyncpa [#allocation8], 0 }
  0x10   :  { %23 = vsyncpa [#allocation8 + $0x1], 0 }
  0x11   :  { %24 = vsyncpa [#allocation11], 0 }
  0x12   :  { %26 = vsyncpa [#allocation11 + $0x1], 0 }
  0x13   :  { %27 = vsyncpa [#allocation14], 0 }
  0x14   :  { %29 = vsyncpa [#allocation14 + $0x1], 0 }
  0x15   :  { %30 = vsyncpa [#allocation17], 0 }
  0x16   :  { %32 = vsyncpa [#allocation17 + $0x1], 0 }
  0x17   :  { %33 = vsyncpa [#allocation6], 0 }
  0x18   :  { %35 = vsyncpa [#allocation6 + $0x1], 0  ;;  %s3674_s25 = smov 0   ;;  %s3676_s26 = smov 0  }
  0x19   :  { %s3678_s27 = smov 0   ;;  %s3680_s28 = smov 0  }
  0x1a   :  { %s3682_s29 = smov 0   ;;  %s3684_s30 = smov 0  }
  0x1b   :  { %s3686_s14 = smov 0   ;;  %s3688_s15 = smov 0  }
  0x1c   :  { %s3690_s16 = smov 0   ;;  %s3692_s17 = smov 0  }
  0x1d   :  { %s3694_s18 = smov 0  }
  0x1e LB: > { %4622 = sst [smem:[#allocation26_spill]] %s3536_s26  ;;  %s3730_s19 = sadd.s32 4294967295, %s3572_s18   ;;  %s3572_s18 = sphi %s3694_s18, %s41_s18   ;;  %s3568_s17 = sphi %s3692_s17, %s4725_s17   ;;  %s3564_s16 = sphi %s3690_s16, %s4724_s16   ;;  %s3560_s15 = sphi %s3688_s15, %s4723_s15   ;;  %s3556_s14 = sphi %s3686_s14, %s4722_s14   ;;  %s3552_s30 = sphi %s3684_s30, %s4729_s30   ;;  %s3548_s29 = sphi %s3682_s29, %s4728_s29   ;;  %s3544_s28 = sphi %s3680_s28, %s4720_s28   ;;  %s3540_s27 = sphi %s3678_s27, %s4727_s27   ;;  %s3536_s26 = sphi %s3676_s26, %s4726_s26   ;;  %s3532_s25 = sphi %s3674_s25, %s4719_s25  }
  0x1f   : > { %4623 = sst [smem:[#allocation27_spill]] %s3544_s28  ;;  %s2670_s20 = sadd.s32 4294967294, %s3572_s18  }
  0x20   : > { %4624 = sst [smem:[#allocation28_spill]] %s3548_s29  ;;  %s50_s21 = sadd.s32 1, %s3564_s16 }
  0x21   : > { %4625 = sst [smem:[#allocation29_spill]] %s3556_s14  ;;  %s60_s22 = sadd.s32 1, %s3552_s30 }
  0x22   : > { %4626 = sst [smem:[#allocation30_spill]] %s3560_s15  ;;  %p3735_p0 = scmp.ge.s32.totalorder %s50_s21, 2 }
  0x23   : > { %4627 = sst [smem:[#allocation31_spill]] %s3564_s16  ;;  %p67_p1 = scmp.ne.s32.totalorder %s3552_s30, %s3548_s29 }
  0x24   : > { %4628 = sst [smem:[#allocation32_spill]] %s3568_s17  ;;  %p68_p2 = scmp.eq.s32.totalorder %s3572_s18, 0 }
  0x25   : > { %4629 = sst [smem:[#allocation33_spill]] %s3572_s18  ;;  %p4573_p3 = scmp.ne.s32.totalorder %s3548_s29, %s3544_s28 }
  0x26   : > { %4630 = sst [smem:[#allocation34_spill]] %s3730_s19  ;;  %s4731_s21 = smov (%p3735_p0, %s50_s21), 0 }
  0x27   : > { %s4631_s23 = scalar_select %p3735_p0, 1, 0 }
  0x28   : > { %4632 = sst [smem:[#allocation35_spill]] %s4731_s21  ;;  %p3751_p4 = por %p68_p2, %p67_p1 }
  0x29   : > { %p74_p5 = scmp.eq.s32.totalorder %s3730_s19, 0  ;;  %s57_s13 = ssub.s32 %s3564_s16, %s4731_s21 }
  0x2a   : > { %p249_p6 = scmp.ne.s32.totalorder %s3540_s27, %s3536_s26  ;;  %p58_p7 = scmp.eq.s32.totalorder %s57_s13, 0 }
  0x2b   : > { %p3763_p8 = por %p74_p5, %p4573_p3  ;;  %p255_p10 = scmp.ne.s32.totalorder %s3536_s26, %s3532_s25 }
  0x2c   : > { %p3767_p9 = por %p249_p6, %p68_p2  ;;  %p409_p12 = scmp.eq.s32.totalorder %s3730_s19, 3 }
  0x2d   : > { %s4634_s14 = scalar_select %p3763_p8, 1, 0 }
  0x2e   : > { %s3774_s10 = scalar_select %p58_p7, %s3552_s30, %s60_s22  }
  0x2f   : > { %4635 = sst [smem:[#allocation36_spill]] %s4634_s14  ;;  %p3776_p11 = por %p255_p10, %p74_p5 }
  0x30   : > { %4637 = sst [smem:[#allocation37_spill]] %s3774_s10  ;;  %p415_p13 = scmp.eq.s32.totalorder %s2670_s20, 3 }
  0x31   : > { %s4638_s6 = scalar_select %p3776_p11, 1, 0 }
  0x32   : > { %p3784_p0 = por %p409_p12, %p67_p1  ;;  %p3025_p3 = scmp.lt.s32.totalorder %s3572_s18, 4 }
  0x33   : > { %4639 = sst [smem:[#allocation38_spill]] %s4638_s6  ;;  %p4642_p2 = scmp.ne.s32.totalorder %s3548_s29, %s3544_s28 }
  0x34   : > { %s4640_s13 = scalar_select %p3784_p0, 1, 0 }
  0x35   : > { %p3792_p6 = por %p415_p13, %p4642_p2  ;;  %s4579_s25 = sand.u32 1, %s3552_s30  }
  0x36   : > { %4641 = sst [smem:[#allocation39_spill]] %s4640_s13  ;;  %s3799_s22 = sshll.u32 %s4579_s25, 3 }
  0x37   : > { %s4643_s21 = scalar_select %p3792_p6, 1, 0 }
  0x38   : > { %s3802_s10 = sshll.u32 %s3564_s16, 7  ;;  %p3806_p5 = pnand %p3025_p3, %p3751_p4 }
  0x39   : > { %4644 = sst [smem:[#allocation40_spill]] %s4643_s21  ;;  %s3811_s13 = sand.u32 1, %s3572_s18  }
  0x3a   : > { %s4645_s20 = scalar_select %p3806_p5, 1, 0 }
  0x3b   : > { %s4646_s1 = sld [smem:[#allocation44_spill]]  ;;  %s457_s25 = scalar_lea.vmem [#allocation7], %s3799_s22 }
  0x3c   : > { %s464_s24 = sshll.u32 %s457_s25, 4  ;;  %p3822_p1 = pnand %p3025_p3, %p3767_p9  ;;  %s3826_s24 = int_to_ptr.vmem [resolvable:$true] %s464_s24 }
  0x3d   : > { %p3833_p7 = pneg %p3806_p5 }
  0x3e   : > { %s4647_s16 = scalar_select %p3822_p1, 1, 0 }
  0x3f   : > { %s4648_s5 = scalar_select %p3833_p7, 1, 0 }
  0x41   : > { %s3817_s21 = scalar_lea.hbm %s4646_s1, %s3802_s10  ;;  %s3195_s25 = scalar_lea.hbm %s4646_s1, 256 }
  0x42   : > { %s3190_s15 = scalar_lea.hbm %s3817_s21, 128  ;;  %p3196_p3 = scmp.lt.u32.totalorder %s3817_s21, %s4646_s1 }
  0x43   : > { %p3191_p4 = scmp.ne.s32.totalorder %s3817_s21, %s3190_s15  ;;  %p3197_p9 = scmp.lt.u32.totalorder %s3195_s25, %s3190_s15 }
  0x44   : > { %p3199_p2 = scmp.lt.u32.totalorder %s3190_s15, %s3817_s21 }
  0x45   : > { %p3193_p10 = pnand %p3833_p7, %p3191_p4  ;;  %p3198_p13 = por %p3197_p9, %p3196_p3 }
  0x47   : > { %p3194_p12 = pneg %p3193_p10  ;;  %p3200_p6 = por %p3199_p2, %p3198_p13 }
  0x49   : > { %p3201_p0 = pnand %p3200_p6, %p3194_p12 }
  0x4b   : > { %3204 = shalt.err (!%p3201_p0)
}
  0x4c   : > { %s3205_s4 = scalar_lea.vmem %s3826_s24, 128  ;;  %s3574_s28 = smov [#allocation7]  }
  0x4d   : > { %p3206_p4 = scmp.ne.s32.totalorder %s3826_s24, %s3205_s4  ;;  %s3210_s11 = sshll.u32 %s3574_s28, 4  ;;  %s3211_s11 = int_to_ptr.vmem [resolvable:$false] %s3210_s11 }
  0x4e   : > { %s3212_s6 = scalar_lea.vmem %s3211_s11, 256  ;;  %p3213_p8 = scmp.lt.s32.totalorder %s3826_s24, %s3211_s11 }
  0x4f   : > { %p3208_p10 = pnand %p3206_p4, %p3833_p7  ;;  %p3214_p1 = scmp.lt.s32.totalorder %s3212_s6, %s3205_s4 }
  0x51   : > { %p3209_p11 = pneg %p3208_p10  ;;  %p3215_p3 = por %p3214_p1, %p3213_p8 }
  0x53   : > { %p3216_p9 = pnand %p3215_p3, %p3209_p11 }
  0x55   : > { %3219 = shalt.err (!%p3216_p9)
}
  0x56   : > { %s4649_s26 = scalar_lea.sflag [#allocation8], %s3811_s13  ;;  %p2693_p0 = scmp.ge.s32.totalorder %s3572_s18, 1 }
  0x57   : > { %3002 = dma.hbm_to_vmem [thread:$0]  (!%p3806_p5), %s3817_s21, 128, %s3826_s24, %s4649_s26  }
  0x58   : > { %p627_p6 = scmp.lt.s32.totalorder %s3572_s18, 5  ;;  %s4650_s3 = sld [smem:[#allocation46_spill]] }
  0x59   : > { %s493_s11 = scalar_lea.vmem [#allocation10], %s3799_s22 }
  0x5a   : > { %p3866_p8 = pnand %p2693_p0, %p627_p6  ;;  %s500_s6 = sshll.u32 %s493_s11, 4  ;;  %s501_s6 = int_to_ptr.vmem [resolvable:$true] %s500_s6 }
  0x5c   : > { %s4651_s28 = scalar_select %p3866_p8, 1, 0 }
  0x5e   : > { %s3864_s25 = scalar_lea.hbm %s4650_s3, %s3802_s10  ;;  %4652 = sst [smem:[#allocation41_spill]] %s4651_s28 }
  0x5f   : > { %s3220_s21 = scalar_lea.hbm %s3864_s25, 128  ;;  %s3225_s15 = scalar_lea.hbm %s4650_s3, 256 }
  0x60   : > { %p3221_p11 = scmp.ne.s32.totalorder %s3864_s25, %s3220_s21  ;;  %p3226_p13 = scmp.lt.u32.totalorder %s3864_s25, %s4650_s3 }
  0x61   : > { %p3227_p2 = scmp.lt.u32.totalorder %s3225_s15, %s3220_s21  ;;  %p3229_p10 = scmp.lt.u32.totalorder %s3220_s21, %s3864_s25 }
  0x62   : > { %p3223_p1 = pnand %p3221_p11, %p3833_p7 }
  0x63   : > { %p3228_p4 = por %p3227_p2, %p3226_p13 }
  0x64   : > { %p3224_p12 = pneg %p3223_p1 }
  0x65   : > { %p3230_p3 = por %p3229_p10, %p3228_p4 }
  0x67   : > { %p3231_p9 = pnand %p3230_p3, %p3224_p12 }
  0x69   : > { %3234 = shalt.err (!%p3231_p9)
}
  0x6a   : > { %s3235_s11 = scalar_lea.vmem %s501_s6, 128  ;;  %s3575_s1 = smov [#allocation10]  }
  0x6b   : > { %p3236_p0 = scmp.ne.s32.totalorder %s501_s6, %s3235_s11  ;;  %s3240_s19 = sshll.u32 %s3575_s1, 4  ;;  %s3241_s19 = int_to_ptr.vmem [resolvable:$false] %s3240_s19 }
  0x6c   : > { %s3242_s24 = scalar_lea.vmem %s3241_s19, 256  ;;  %p3243_p1 = scmp.lt.s32.totalorder %s501_s6, %s3241_s19 }
  0x6d   : > { %p3238_p6 = pnand %p3236_p0, %p3833_p7  ;;  %p3244_p8 = scmp.lt.s32.totalorder %s3242_s24, %s3235_s11 }
  0x6f   : > { %p3239_p11 = pneg %p3238_p6  ;;  %p3245_p5 = por %p3244_p8, %p3243_p1 }
  0x71   : > { %p3246_p2 = pnand %p3245_p5, %p3239_p11 }
  0x73   : > { %3249 = shalt.err (!%p3246_p2)
}
  0x74   : > { %p4653_p13 = scmp.ne.s32.totalorder %s4645_s20, 0  ;;  %s4654_s18 = scalar_lea.sflag [#allocation11], %s3811_s13 }
  0x75   : > { %s53_s19 = sadd.s32 1, %s3568_s17  ;;  %s4594_s21 = sand.u32 1, %s3540_s27  }
  0x76   : > { %3008 = dma.hbm_to_vmem [thread:$0]  (!%p4653_p13), %s3864_s25, 128, %s501_s6, %s4654_s18  }
  0x77   : > { %p4655_p5 = scmp.ne.s32.totalorder %s4631_s23, 0  ;;  %s3899_s26 = sshll.u32 %s4594_s21, 4 }
  0x78   : > { %s3902_s15 = sshll.u32 %s3568_s17, 8  ;;  %s4657_s8 = sld [smem:[#allocation51_spill]] }
  0x79   : > { %s4733_s19 = smov (!%p4655_p5, %s53_s19), %s3568_s17  ;;  %s556_s23 = scalar_lea.vmem [#allocation13], %s3899_s26 }
  0x7a   : > { %p55_p8 = scmp.ge.s32.totalorder %s4733_s19, 2  ;;  %s563_s6 = sshll.u32 %s556_s23, 4  ;;  %s3915_s6 = int_to_ptr.vmem [resolvable:$true] %s563_s6 }
  0x7b   : > { %p4659_p10 = scmp.ne.s32.totalorder %s4647_s16, 0 }
  0x7c   : > { %s4735_s19 = smov (%p55_p8, %s4733_s19), 0 }
  0x7d   : > { %4656 = sst [smem:[#allocation42_spill]] %s4735_s19  ;;  %s239_s24 = ssub.s32 %s3568_s17, %s4735_s19 }
  0x7e   : > { %s3910_s25 = scalar_lea.hbm %s4657_s8, %s3902_s15  ;;  %p3917_p12 = scmp.eq.s32.totalorder %s239_s24, 0 }
  0x7f   : > { %s3250_s1 = scalar_lea.hbm %s3910_s25, 256  ;;  %p3926_p3 = pneg %p4659_p10 }
  0x80   : > { %s4658_s18 = scalar_select %p3917_p12, 1, 0 }
  0x81   : > { %p3251_p4 = scmp.ne.s32.totalorder %s3910_s25, %s3250_s1  ;;  %s3255_s3 = scalar_lea.hbm %s4657_s8, 512 }
  0x82   : > { %s4660_s4 = scalar_select %p3926_p3, 1, 0 }
  0x83   : > { %p3253_p9 = pnand %p3926_p3, %p3251_p4  ;;  %p3256_p6 = scmp.lt.u32.totalorder %s3910_s25, %s4657_s8 }
  0x84   : > { %p3257_p11 = scmp.lt.u32.totalorder %s3255_s3, %s3250_s1  ;;  %p3259_p2 = scmp.lt.u32.totalorder %s3250_s1, %s3910_s25 }
  0x85   : > { %p3254_p0 = pneg %p3253_p9 }
  0x86   : > { %p3258_p1 = por %p3257_p11, %p3256_p6 }
  0x88   : > { %p3260_p5 = por %p3259_p2, %p3258_p1 }
  0x8a   : > { %p3261_p8 = pnand %p3260_p5, %p3254_p0 }
  0x8c   : > { %3264 = shalt.err (!%p3261_p8)
}
  0x8d   : > { %s3265_s21 = scalar_lea.vmem %s3915_s6, 256  ;;  %s3576_s11 = smov [#allocation13]  }
  0x8e   : > { %p3266_p4 = scmp.ne.s32.totalorder %s3915_s6, %s3265_s21  ;;  %s3270_s23 = sshll.u32 %s3576_s11, 4  ;;  %s3271_s23 = int_to_ptr.vmem [resolvable:$false] %s3270_s23 }
  0x8f   : > { %s3272_s19 = scalar_lea.vmem %s3271_s23, 512  ;;  %p3273_p7 = scmp.lt.s32.totalorder %s3915_s6, %s3271_s23 }
  0x90   : > { %p3268_p9 = pnand %p3266_p4, %p3926_p3  ;;  %p3274_p12 = scmp.lt.s32.totalorder %s3272_s19, %s3265_s21 }
  0x92   : > { %p3269_p13 = pneg %p3268_p9  ;;  %p3275_p6 = por %p3274_p12, %p3273_p7 }
  0x94   : > { %p3276_p11 = pnand %p3275_p6, %p3269_p13 }
  0x96   : > { %3279 = shalt.err (!%p3276_p11)
}
  0x97   : > { %s4603_s3 = smov 64   ;;  %s4606_s1 = smov 4  }
  0x98   : > { %s4661_s21 = scalar_lea.sflag [#allocation14], %s3811_s13  ;;  %s4662_s24 = sadd.s32 1, %s3540_s27 }
  0x99   : > { %3014 = dma.hbm_to_vmem [thread:$0]  (!%p4659_p10), %s3910_s25, 256, %s3915_s6, %s4661_s21, %s4603_s3, %s4603_s3, %s4606_s1  }
  0x9a   : > { %p4663_p7 = scmp.ne.s32.totalorder %s4658_s18, 0  ;;  %s4664_s0 = sld [smem:[#allocation43_spill]] }
  0x9b   : > { %s439_s17 = scalar_lea.vmem [#allocation4], %s3799_s22  ;;  %s4665_s2 = sld [smem:[#allocation45_spill]] }
  0x9c   : > { %s3959_s11 = scalar_select %p4663_p7, %s3540_s27, %s4662_s24  }
  0x9d   : > { %s446_s14 = sshll.u32 %s439_s17, 4  ;;  %s4666_s6 = sand.u32 1, %s3552_s30   ;;  %s3968_s14 = int_to_ptr.vmem [resolvable:$true] %s446_s14 }
  0x9e   : > { %s436_s18 = scalar_lea.sflag [#allocation5], %s4666_s6  ;;  %p4667_p12 = scmp.ne.s32.totalorder %s4648_s5, 0 }
  0xa0   : > { %s3965_s8 = scalar_lea.hbm %s4664_s0, %s3802_s10  ;;  %s3285_s19 = scalar_lea.hbm %s4664_s0, 256 }
  0xa1   : > { %s3974_s25 = scalar_lea.hbm %s4665_s2, %s3802_s10  ;;  %s3280_s21 = scalar_lea.hbm %s3965_s8, 128 }
  0xa2   : > { %p3281_p13 = scmp.ne.s32.totalorder %s3965_s8, %s3280_s21  ;;  %p3286_p2 = scmp.lt.u32.totalorder %s3965_s8, %s4664_s0 }
  0xa3   : > { %p3287_p5 = scmp.lt.u32.totalorder %s3285_s19, %s3280_s21  ;;  %p3289_p4 = scmp.lt.u32.totalorder %s3280_s21, %s3965_s8 }
  0xa4   : > { %p3283_p0 = pnand %p3281_p13, %p4667_p12 }
  0xa5   : > { %p3288_p8 = por %p3287_p5, %p3286_p2 }
  0xa6   : > { %p3284_p1 = pneg %p3283_p0 }
  0xa7   : > { %p3290_p9 = por %p3289_p4, %p3288_p8 }
  0xa9   : > { %p3291_p6 = pnand %p3290_p9, %p3284_p1 }
  0xab   : > { %3294 = shalt.err (!%p3291_p6)
}
  0xac   : > { %s3295_s10 = scalar_lea.vmem %s3968_s14, 128  ;;  %s3579_s29 = smov [#allocation4]  }
  0xad   : > { %p3296_p11 = scmp.ne.s32.totalorder %s3968_s14, %s3295_s10  ;;  %s3300_s28 = sshll.u32 %s3579_s29, 4  ;;  %s3301_s28 = int_to_ptr.vmem [resolvable:$false] %s3300_s28 }
  0xae   : > { %s3302_s3 = scalar_lea.vmem %s3301_s28, 256  ;;  %p3303_p0 = scmp.lt.s32.totalorder %s3968_s14, %s3301_s28 }
  0xaf   : > { %p3298_p7 = pnand %p3296_p11, %p4667_p12  ;;  %p3304_p10 = scmp.lt.s32.totalorder %s3302_s3, %s3295_s10 }
  0xb1   : > { %p3299_p13 = pneg %p3298_p7  ;;  %p3305_p2 = por %p3304_p10, %p3303_p0 }
  0xb3   : > { %p3306_p5 = pnand %p3305_p2, %p3299_p13 }
  0xb5   : > { %3309 = shalt.err (!%p3306_p5)
}
  0xb6   : > { %p4668_p1 = scmp.ne.s32.totalorder %s4645_s20, 0  ;;  %s475_s6 = scalar_lea.vmem [#allocation9], %s3799_s22 }
  0xb7   : > { %s482_s21 = sshll.u32 %s475_s6, 4  ;;  %s4669_s7 = sld [smem:[#allocation50_spill]]  ;;  %s483_s21 = int_to_ptr.vmem [resolvable:$true] %s482_s21 }
  0xb8   : > { %2999 = dma.hbm_to_vmem [thread:$0]  (!%p4668_p1), %s3965_s8, 128, %s3968_s14, %s436_s18  }
  0xb9   : > { %s3310_s17 = scalar_lea.hbm %s3974_s25, 128  ;;  %s3315_s28 = scalar_lea.hbm %s4665_s2, 256 }
  0xba   : > { %p3311_p10 = scmp.ne.s32.totalorder %s3974_s25, %s3310_s17  ;;  %p3316_p9 = scmp.lt.u32.totalorder %s3974_s25, %s4665_s2 }
  0xbb   : > { %p3317_p6 = scmp.lt.u32.totalorder %s3315_s28, %s3310_s17  ;;  %p3319_p7 = scmp.lt.u32.totalorder %s3310_s17, %s3974_s25 }
  0xbc   : > { %p3313_p8 = pnand %p3311_p10, %p4667_p12 }
  0xbd   : > { %s4004_s19 = scalar_lea.hbm %s4669_s7, %s3902_s15  ;;  %p3318_p11 = por %p3317_p6, %p3316_p9 }
  0xbe   : > { %p3314_p4 = pneg %p3313_p8 }
  0xbf   : > { %p3320_p13 = por %p3319_p7, %p3318_p11 }
  0xc1   : > { %p3321_p0 = pnand %p3320_p13, %p3314_p4 }
  0xc3   : > { %3324 = shalt.err (!%p3321_p0)
}
  0xc4   : > { %s3325_s8 = scalar_lea.vmem %s483_s21, 128  ;;  %s3580_s14 = smov [#allocation9]  }
  0xc5   : > { %p3326_p2 = scmp.ne.s32.totalorder %s483_s21, %s3325_s8  ;;  %s3330_s22 = sshll.u32 %s3580_s14, 4  ;;  %s3331_s22 = int_to_ptr.vmem [resolvable:$false] %s3330_s22 }
  0xc6   : > { %s3332_s18 = scalar_lea.vmem %s3331_s22, 256  ;;  %p3333_p8 = scmp.lt.s32.totalorder %s483_s21, %s3331_s22 }
  0xc7   : > { %p3328_p5 = pnand %p3326_p2, %p4667_p12  ;;  %p3334_p3 = scmp.lt.s32.totalorder %s3332_s18, %s3325_s8 }
  0xc9   : > { %p3329_p10 = pneg %p3328_p5  ;;  %p3335_p1 = por %p3334_p3, %p3333_p8 }
  0xcb   : > { %p3336_p6 = pnand %p3335_p1, %p3329_p10 }
  0xcd   : > { %3339 = shalt.err (!%p3336_p6)
}
  0xce   : > { %p4670_p9 = scmp.ne.s32.totalorder %s4645_s20, 0  ;;  %s4671_s1 = scalar_lea.sflag [#allocation8], %s3811_s13 }
  0xcf   : > { %s535_s5 = scalar_lea.vmem [#allocation12], %s3899_s26  ;;  %s4032_s17 = scalar_lea.hbm %s4566_s9, %s3902_s15 }
  0xd0   : > { %3005 = dma.hbm_to_vmem [thread:$0]  (!%p4670_p9), %s3974_s25, 128, %s483_s21, %s4671_s1  }
  0xd1   : > { %s542_s6 = sshll.u32 %s535_s5, 4  ;;  %s3340_s20 = scalar_lea.hbm %s4004_s19, 256  ;;  %s4026_s6 = int_to_ptr.vmem [resolvable:$true] %s542_s6 }
  0xd2   : > { %p3341_p3 = scmp.ne.s32.totalorder %s4004_s19, %s3340_s20  ;;  %p4672_p12 = scmp.ne.s32.totalorder %s4660_s4, 0 }
  0xd3   : > { %s3345_s28 = scalar_lea.hbm %s4669_s7, 512  ;;  %p3346_p11 = scmp.lt.u32.totalorder %s4004_s19, %s4669_s7 }
  0xd4   : > { %p3343_p1 = pnand %p3341_p3, %p4672_p12  ;;  %p3347_p7 = scmp.lt.u32.totalorder %s3345_s28, %s3340_s20 }
  0xd5   : > { %p3349_p0 = scmp.lt.u32.totalorder %s3340_s20, %s4004_s19 }
  0xd6   : > { %p3344_p4 = pneg %p3343_p1  ;;  %p3348_p13 = por %p3347_p7, %p3346_p11 }
  0xd8   : > { %p3350_p2 = por %p3349_p0, %p3348_p13 }
  0xda   : > { %p3351_p5 = pnand %p3350_p2, %p3344_p4 }
  0xdc   : > { %3354 = shalt.err (!%p3351_p5)
}
  0xdd   : > { %s3355_s21 = scalar_lea.vmem %s4026_s6, 256  ;;  %s3581_s8 = smov [#allocation12]  }
  0xde   : > { %p3356_p10 = scmp.ne.s32.totalorder %s4026_s6, %s3355_s21  ;;  %s3360_s14 = sshll.u32 %s3581_s8, 4  ;;  %s3361_s14 = int_to_ptr.vmem [resolvable:$false] %s3360_s14 }
  0xdf   : > { %s3362_s22 = scalar_lea.vmem %s3361_s14, 512  ;;  %p3363_p9 = scmp.lt.s32.totalorder %s4026_s6, %s3361_s14 }
  0xe0   : > { %p3358_p8 = pnand %p3356_p10, %p4672_p12  ;;  %p3364_p3 = scmp.lt.s32.totalorder %s3362_s22, %s3355_s21 }
  0xe2   : > { %p3359_p6 = pneg %p3358_p8  ;;  %p3365_p1 = por %p3364_p3, %p3363_p9 }
  0xe4   : > { %p3366_p11 = pnand %p3365_p1, %p3359_p6 }
  0xe6   : > { %3369 = shalt.err (!%p3366_p11)
}
  0xe7   : > { %p4673_p4 = scmp.ne.s32.totalorder %s4647_s16, 0  ;;  %s4674_s18 = smov 4  }
  0xe8   : > { %s4675_s1 = smov 64   ;;  %s4676_s5 = scalar_lea.sflag [#allocation11], %s3811_s13 }
  0xe9   : > { %3011 = dma.hbm_to_vmem [thread:$0]  (!%p4673_p4), %s4004_s19, 256, %s4026_s6, %s4676_s5, %s4675_s1, %s4675_s1, %s4674_s18  }
  0xea   : > { %s577_s24 = scalar_lea.vmem [#allocation15], %s3899_s26  ;;  %s3370_s20 = scalar_lea.hbm %s4032_s17, 256 }
  0xeb   : > { %s584_s23 = sshll.u32 %s577_s24, 4  ;;  %p3371_p7 = scmp.ne.s32.totalorder %s4032_s17, %s3370_s20  ;;  %s4061_s23 = int_to_ptr.vmem [resolvable:$true] %s584_s23 }
  0xec   : > { %s3375_s28 = scalar_lea.hbm %s4566_s9, 512  ;;  %p3376_p2 = scmp.lt.u32.totalorder %s4032_s17, %s4566_s9 }
  0xed   : > { %p3373_p13 = pnand %p3371_p7, %p4672_p12  ;;  %p3377_p5 = scmp.lt.u32.totalorder %s3375_s28, %s3370_s20 }
  0xee   : > { %p3379_p8 = scmp.lt.u32.totalorder %s3370_s20, %s4032_s17 }
  0xef   : > { %p3374_p0 = pneg %p3373_p13  ;;  %p3378_p10 = por %p3377_p5, %p3376_p2 }
  0xf1   : > { %p3380_p6 = por %p3379_p8, %p3378_p10 }
  0xf3   : > { %p3381_p9 = pnand %p3380_p6, %p3374_p0 }
  0xf5   : > { %3384 = shalt.err (!%p3381_p9)
}
  0xf6   : > { %s3385_s19 = scalar_lea.vmem %s4061_s23, 256  ;;  %s3582_s6 = smov [#allocation15]  }
  0xf7   : > { %p3386_p3 = scmp.ne.s32.totalorder %s4061_s23, %s3385_s19  ;;  %s3390_s21 = sshll.u32 %s3582_s6, 4  ;;  %s3391_s21 = int_to_ptr.vmem [resolvable:$false] %s3390_s21 }
  0xf8   : > { %s3392_s8 = scalar_lea.vmem %s3391_s21, 512  ;;  %p3393_p7 = scmp.lt.s32.totalorder %s4061_s23, %s3391_s21 }
  0xf9   : > { %p3388_p1 = pnand %p3386_p3, %p4672_p12  ;;  %p3394_p13 = scmp.lt.s32.totalorder %s3392_s8, %s3385_s19 }
  0xfb   : > { %p3389_p11 = pneg %p3388_p1  ;;  %p3395_p2 = por %p3394_p13, %p3393_p7 }
  0xfd   : > { %p3396_p5 = pnand %p3395_p2, %p3389_p11 }
  0xff   : > { %3399 = shalt.err (!%p3396_p5)
}
 0x100   : > { %s4677_s14 = scalar_lea.sflag [#allocation14], %s3811_s13  ;;  %s4093_s24 = scalar_lea.hbm %s4569_s12, %s3902_s15 }
 0x101   : > { %3017 = dma.hbm_to_vmem [thread:$0]  (!%p4673_p4), %s4032_s17, 256, %s4061_s23, %s4677_s14, %s4675_s1, %s4675_s1, %s4674_s18  }
 0x102   : > { %s612_s20 = scalar_lea.vmem [#allocation16], %s3899_s26  ;;  %s4678_s13 = sand.u32 1, %s3540_s27  }
 0x103   : > { %s619_s10 = sshll.u32 %s612_s20, 4  ;;  %s4100_s29 = scalar_lea.sflag [#allocation17], %s4678_s13  ;;  %s4096_s10 = int_to_ptr.vmem [resolvable:$true] %s619_s10 }
 0x104   : > { %s3400_s28 = scalar_lea.hbm %s4093_s24, 256  ;;  %s3405_s15 = scalar_lea.hbm %s4569_s12, 512 }
 0x105   : > { %p3401_p0 = scmp.ne.s32.totalorder %s4093_s24, %s3400_s28  ;;  %p3406_p6 = scmp.lt.u32.totalorder %s4093_s24, %s4569_s12 }
 0x106   : > { %p3407_p9 = scmp.lt.u32.totalorder %s3405_s15, %s3400_s28  ;;  %p3409_p1 = scmp.lt.u32.totalorder %s3400_s28, %s4093_s24 }
 0x107   : > { %p3403_p10 = pnand %p3401_p0, %p4672_p12 }
 0x108   : > { %p3408_p3 = por %p3407_p9, %p3406_p6 }
 0x109   : > { %p3404_p8 = pneg %p3403_p10 }
 0x10a   : > { %p3410_p11 = por %p3409_p1, %p3408_p3 }
 0x10c   : > { %p3411_p7 = pnand %p3410_p11, %p3404_p8 }
 0x10e   : > { %3414 = shalt.err (!%p3411_p7)
}
 0x10f   : > { %s3415_s26 = scalar_lea.vmem %s4096_s10, 256  ;;  %s3583_s3 = smov [#allocation16]  }
 0x110   : > { %p3416_p13 = scmp.ne.s32.totalorder %s4096_s10, %s3415_s26  ;;  %s3420_s25 = sshll.u32 %s3583_s3, 4  ;;  %s3421_s25 = int_to_ptr.vmem [resolvable:$false] %s3420_s25 }
 0x111   : > { %s3422_s19 = scalar_lea.vmem %s3421_s25, 512  ;;  %p3423_p0 = scmp.lt.s32.totalorder %s4096_s10, %s3421_s25 }
 0x112   : > { %p3418_p2 = pnand %p3416_p13, %p4672_p12  ;;  %p3424_p10 = scmp.lt.s32.totalorder %s3422_s19, %s3415_s26 }
 0x114   : > { %p3419_p5 = pneg %p3418_p2  ;;  %p3425_p6 = por %p3424_p10, %p3423_p0 }
 0x116   : > { %p3426_p9 = pnand %p3425_p6, %p3419_p5 }
 0x118   : > { %3429 = shalt.err (!%p3426_p9)
}
 0x119   : > { %s3584_s6 = smov 128   ;;  %s3585_s21 = smov 8  }
 0x11a   : > { %3020 = dma.hbm_to_vmem [thread:$0]  (!%p4673_p4), %s4093_s24, 256, %s4096_s10, %s4100_s29, %s3584_s6, %s3584_s6, %s3585_s21  }
 0x11b   : > { %s4679_s4 = sld [smem:[#allocation41_spill]] }
 0x121   : > { %p4680_p12 = scmp.ne.s32.totalorder %s4679_s4, 0 }
 0x122   : > { %s4681_s8 = sld [smem:[#allocation28_spill]] (!%p4680_p12)  ;;  %s4682_s14 = sld [smem:[#allocation36_spill]] (!%p4680_p12) }
 0x123   : > { %631 = sbr.rel (%p4680_p12) target bundleno = 4660 (0x1234), region = 72 }
 0x128   : > { %s4127_s22 = sand.u32 (!%p4680_p12), 1, %s4681_s8   ;;  %p4683_p8 = scmp.ne.s32.totalorder (!%p4680_p12), %s4682_s14, 0 }
 0x129   : > { %s4130_s5 = sshll.u32 (!%p4680_p12), %s4127_s22, 3  ;;  %s634_s20 = scalar_lea.sflag (!%p4680_p12), [#allocation5], %s4127_s22 }
 0x12a   : > { %3503 = dma.done.wait (%p4683_p8), %s634_s20, 128  }
 0x12b   : > { %3505 = vsyncadd (%p4683_p8), %s634_s20, 4294967168  ;;  %s4684_s16 = sld [smem:[#allocation34_spill]] }
 0x131   : > { %s642_s24 = sand.u32 1, %s4684_s16  }
 0x132   : > { %s643_s10 = scalar_lea.sflag [#allocation8], %s642_s24 }
 0x133   : > { %3507 = dma.done.wait (%p4683_p8), %s643_s10, 256  }
 0x134   : > { %3509 = vsyncadd (%p4683_p8), %s643_s10, 4294967040  ;;  %s661_s17 = scalar_lea.sflag [#allocation11], %s642_s24 }
 0x135   : > { %3511 = dma.done.wait (%p4683_p8), %s661_s17, 128  }
 0x136   : > { %3513 = vsyncadd (%p4683_p8), %s661_s17, 4294967168  ;;  %s4685_s15 = sld [smem:[#allocation26_spill]]  ;;  %s4686_s1 = sld [smem:[#allocation38_spill]] }
 0x13c   : > { %s671_s23 = sand.u32 1, %s4685_s15   ;;  %p4687_p4 = scmp.ne.s32.totalorder %s4686_s1, 0 }
 0x13d   : > { %s4151_s26 = sshll.u32 %s671_s23, 4 }
 0x13e   : > { %3515 = dma.done.wait (%p4687_p4), %s661_s17, 256  }
 0x13f   : > { %3517 = vsyncadd (%p4687_p4), %s661_s17, 4294967040  ;;  %s679_s25 = scalar_lea.sflag [#allocation14], %s642_s24 }
 0x140   : > { %3519 = dma.done.wait (%p4687_p4), %s679_s25, 512  }
 0x141   : > { %3521 = vsyncadd (%p4687_p4), %s679_s25, 4294966784  ;;  %s697_s21 = scalar_lea.sflag [#allocation17], %s671_s23 }
 0x142   : > { %3523 = dma.done.wait (%p4687_p4), %s697_s21, 256  }
 0x143   : > { %3525 = vsyncadd (%p4687_p4), %s697_s21, 4294967040  ;;  %s4688_s8 = sld [smem:[#allocation30_spill]]  ;;  %s4689_s17 = sld [smem:[#allocation47_spill]] }
 0x144   : > { %s4690_s6 = sld [smem:[#allocation48_spill]]  ;;  %s4691_s18 = sld [smem:[#allocation49_spill]] }
 0x145   : > { %s4692_s4 = sld [smem:[#allocation52_spill]]  ;;  %s4693_s7 = sld [smem:[#allocation53_spill]] }
 0x146   : > { %s800_s10 = scalar_lea.vmem [#allocation18], %s4130_s5 }
 0x149   : > { %p801_p3 = scmp.lt.s32.totalorder %s4688_s8, 1  ;;  %p2711_p1 = scmp.ne.s32.totalorder %s4688_s8, 0 }
 0x14a   : > { %vm832_vm0 = vcmask (!%p2711_p1), 261120  }
 0x14b   : > { %s4171_s14 = scalar_select %p801_p3, %s4688_s8, 1 }
 0x14c   : > { %828 = sbr.rel (%p2711_p1) target bundleno = 346 (0x15a), region = 108 }
 0x14d   : > { %s2763_s20 = sshll.u32 %s4171_s14, 4  ;;  %s2766_s16 = sshll.u32 %s4171_s14, 5 }
 0x14e   : > { %s805_s15 = scalar_lea.vmem %s4689_s17, %s2763_s20  ;;  %s4181_s1 = scalar_lea.vmem %s4690_s6, %s2763_s20 }
 0x14f   : > { %s4186_s29 = scalar_lea.vmem %s4691_s18, %s2763_s20  ;;  %s4191_s13 = scalar_lea.vmem %s4692_s4, %s2766_s16 }
 0x150   : > { %s823_s24 = scalar_lea.vmem %s4693_s7, %s4171_s14  ;;  %s4694_s6 = scalar_lea.vmem (!%p2711_p1), [#allocation4], %s4130_s5 }
 0x151   : > { %s4695_s17 = sld [smem:[#allocation29_spill]] (!%p2711_p1)  ;;  %v829_v0 = vld [vmem:[%s4694_s6] sm:$0xff] (!%p2711_p1) }
 0x157   : > { %s2712_s19 = sshll.u32 %s4695_s17, 3 }
 0x158   : > { %s831_s18 = scalar_lea.vmem [#allocation2], %s2712_s19 }
 0x159   : > { %833 = vst.msk [vmem:[%s831_s18] sm:$0xff] %vm832_vm0, %v829_v0 }
 0x15a PF: > { %v3136_v1 = vld [vmem:[%s805_s15] sm:$0xff]   ;;  %s4696_s28 = sld [smem:[#allocation29_spill]]  ;;  %v903_v2 = vlaneseq  ;;  %v3586_v3 = vmov 0.0   ;;  %v3137_v4 = vld [vmem:[%s805_s15 + $0x8] sm:$0xff]   ;;  %vm3587_vm1 = vmmov 0   ;;  %vm859_vm2 = vcmask 261120  }
 0x15b   : > { %2822 = vmatprep.subr.bf16.mxu1 %v3586_v3  ;;  %2836 = vmatprep.subr.bf16.mxu0 %v3586_v3  ;;  %s4697_s2 = scalar_lea.vmem [#allocation16], %s4151_s26  ;;  %s3588_s3 = smov 32   ;;  %vm932_vm3 = vcmask 64512   ;;  %vm999_vm4 = vcmask 1043456   ;;  %vm1161_vm5 = vcmask 130112   ;;  %vm1279_vm6 = vcmask 195712  }
 0x15c   : > { %2823 = vmatpush3.bf16.msra.mxu1 %v3136_v1  ;;  %2826 = vmatprep.mubr.msk.bf16.mxu1 %vm3587_vm1, %v3586_v3  ;;  %v4209_v5 = vld [vmem:[%s4697_s2] sm:$0xff]  ;;  %v4211_v6 = vshrl.u32 %v903_v2, 7  ;;  %s3589_s4 = smov 88   ;;  %s3590_s8 = smov 96   ;;  %vm1397_vm7 = vcmask 261312   ;;  %vm2287_vm8 = vcmask 523264  }
 0x15d   : > { %2824 = vmatprep.subr.bf16.mxu1 %v3586_v3  ;;  %2838 = vmatprep.mubr.msk.bf16.mxu0 %vm3587_vm1, %v3586_v3  ;;  %s3591_s20 = smov 80   ;;  %s3592_s16 = smov 120  }
 0x15e   : > { %v910_v8 = vsub.s32 1, %v4211_v6  ;;  %v905_v11 = vsub.s32 0, %v4211_v6  ;;  %s3593_s15 = smov 72   ;;  %s3594_s23 = smov 112   ;;  %v919_v55 = vsub.s32 2, %v4211_v6 }
 0x15f   : > { %s3595_s25 = smov 104   ;;  %s4698_s21 = scalar_lea.vmem [#allocation9], %s4130_s5 }
 0x160   : > { %s2713_s0 = sshll.u32 %s4696_s28, 3  ;;  %2825 = vmatpush3.bf16.msra.mxu1 %v3137_v4  ;;  %v911_v10 = vrot.slane %v4209_v5, %v910_v8  ;;  %v906_v13 = vrot.slane %v4209_v5, %v905_v11  ;;  %v840_v34 = vld [vmem:[%s4698_s21] sm:$0xff]  ;;  %v920_v62 = vrot.slane %v4209_v5, %v919_v55  ;;  %s3596_s6 = smov 64  }
 0x161   : > { %s4216_s7 = scalar_lea.vmem [#allocation2], %s2713_s0  ;;  %2830 = vmatprep.subr.bf16.mxu1 %v3586_v3  ;;  %s3597_s17 = smov 48  }
 0x162   : > { %v4219_v7 = vld [vmem:[%s4216_s7] sm:$0xff]  ;;  %913 = vrot.lane.b32.xlu0 %v911_v10, %s3588_s3  ;;  %s3598_s19 = smov 40   ;;  %s3599_s18 = smov 56  }
 0x163   : > { %v842_v9 = vpack.c.bf16 %v4219_v7, %v4219_v7  ;;  %s3600_s28 = smov 8   ;;  %s3601_s0 = smov 16  }
 0x164   : > { %s3602_s2 = smov 24  }
 0x165   : > { %2827 = vmatmul.mubr.msk.bf16.vlgmr.msra.gmra.mrb[0].mxu1 %vm859_vm2, %v842_v9 }
 0x166   : > { %2832 = vmatprep.mubr.msk.bf16.mxu1 %vm3587_vm1, %v3586_v3 }
 0x1d4   : > { %v914_v12 = vpop.permute.xlu0 %913 }
 0x238   : > { %v4236_v14 = vpop.f32.mrb[0].mxu1 }
 0x239   : > { %v916_v15 = vadd.f32 %v914_v12, %v4236_v14  ;;  %v2828_v16 = vpop.f32.mrb[1].mxu1  ;;  %v907_v18 = vadd.f32 %v906_v13, %v4236_v14 }
 0x23a   : > { %v900_v17 = vpop.f32.mrb[2].mxu1 }
 0x23b   : > { %v927_v19 = vpack.c.bf16 %v916_v15, %v916_v15  ;;  %v2829_v20 = vpop.f32.mrb[3].mxu1  ;;  %v926_v21 = vpack.c.bf16 %v907_v18, %v907_v18 }
 0x23d   : > { %1047 = vrot.lane.b32.xlu1 %v927_v19, %s3589_s4  ;;  %930 = vrot.lane.b32.xlu0 %v927_v19, %s3590_s8 }
 0x241   : > { %1165 = vrot.lane.b32.xlu0 %v927_v19, %s3591_s20  ;;  %1045 = vrot.lane.b32.xlu1 %v926_v21, %s3592_s16 }
 0x245   : > { %1283 = vrot.lane.b32.xlu0 %v927_v19, %s3593_s15  ;;  %1163 = vrot.lane.b32.xlu1 %v926_v21, %s3594_s23 }
 0x249   : > { %1281 = vrot.lane.b32.xlu1 %v926_v21, %s3595_s25 }
 0x2af   : > { %v931_v22 = vpop.permute.xlu0 %930  ;;  %v1048_v24 = vpop.permute.xlu1 %1047 }
 0x2b0   : > { %v937_v23 = vsel %vm932_vm3, %v931_v22, 0  ;;  %v1053_v25 = vsel %vm932_vm3, %v1048_v24, 0 }
 0x2b1   : > { %2831 = vmatpush3.bf16.xpose.msra.mxu1 %v937_v23 }
 0x2b2   : > { %2842 = vmatprep.subr.bf16.mxu1 %v3586_v3 }
 0x2b3   : > { %v1166_v26 = vpop.permute.xlu0 %1165  ;;  %v1046_v27 = vpop.permute.xlu1 %1045 }
 0x2b4   : > { %v1171_v28 = vsel %vm932_vm3, %v1166_v26, 0 }
 0x2b7   : > { %v1284_v29 = vpop.permute.xlu0 %1283  ;;  %v1164_v30 = vpop.permute.xlu1 %1163 }
 0x2b8   : > { %2833 = vmatmul.mubr.msk.bf16.vlgmr.msra.gmra.mrb[4].mxu1 %vm932_vm3, %v926_v21  ;;  %v1289_v31 = vsel %vm932_vm3, %v1284_v29, 0 }
 0x2b9   : > { %2843 = vmatpush3.bf16.xpose.msra.mxu1 %v1053_v25  ;;  %2844 = vmatprep.mubr.msk.bf16.mxu1 %vm3587_vm1, %v3586_v3 }
 0x2ba   : > { %2854 = vmatprep.subr.bf16.mxu1 %v3586_v3 }
 0x2bb   : > { %v1282_v32 = vpop.permute.xlu1 %1281 }
 0x2c0   : > { %2845 = vmatmul.mubr.msk.bf16.vlgmr.msra.gmra.mrb[8].mxu1 %vm932_vm3, %v1046_v27 }
 0x2c1   : > { %2855 = vmatpush3.bf16.xpose.msra.mxu1 %v1171_v28  ;;  %2856 = vmatprep.mubr.msk.bf16.mxu1 %vm3587_vm1, %v3586_v3 }
 0x2c2   : > { %2866 = vmatprep.subr.bf16.mxu1 %v3586_v3 }
 0x2c8   : > { %2857 = vmatmul.mubr.msk.bf16.vlgmr.msra.gmra.mrb[12].mxu1 %vm932_vm3, %v1164_v30 }
 0x2c9   : > { %2867 = vmatpush3.bf16.xpose.msra.mxu1 %v1289_v31  ;;  %2868 = vmatprep.mubr.msk.bf16.mxu1 %vm3587_vm1, %v3586_v3 }
 0x2ca   : > { %2878 = vmatprep.subr.bf16.mxu1 %v3586_v3 }
 0x2d0   : > { %2869 = vmatmul.mubr.msk.bf16.vlgmr.msra.gmra.mrb[16].mxu1 %vm932_vm3, %v1282_v32 }
 0x2d1   : > { %2882 = vmatprep.mubr.msk.bf16.mxu1 %vm3587_vm1, %v3586_v3 }
 0x38b   : > { %v973_v33 = vpop.f32.mrb[4].mxu1 }
 0x38c   : > { %v979_v35 = vmul.f32 0.35355338, %v973_v33  ;;  %v2834_v36 = vpop.f32.mrb[5].mxu1 }
 0x38d   : > { %v976_v37 = vpop.f32.mrb[6].mxu1 }
 0x38e   : > { %v2835_v38 = vpop.f32.mrb[7].mxu1  ;;  %v980_v39 = vadd.f32 %v979_v35, %v840_v34 }
 0x390   : > { %v981_v40 = vsel %vm932_vm3, %v980_v39, -inf }
 0x391   : > { %982 = vmax.xlane.f32.xlu0 %v981_v40 }
 0x393   : > { %v1089_v41 = vpop.f32.mrb[8].mxu1 }
 0x394   : > { %v1095_v42 = vmul.f32 0.35355338, %v1089_v41  ;;  %v2846_v43 = vpop.f32.mrb[9].mxu1 }
 0x395   : > { %v1092_v44 = vpop.f32.mrb[10].mxu1 }
 0x396   : > { %v2847_v45 = vpop.f32.mrb[11].mxu1  ;;  %v1096_v46 = vadd.f32 %v1095_v42, %v840_v34 }
 0x398   : > { %v1097_v47 = vsel %vm932_vm3, %v1096_v46, -inf }
 0x399   : > { %1098 = vmax.xlane.f32.xlu1 %v1097_v47 }
 0x39b   : > { %v1207_v48 = vpop.f32.mrb[12].mxu1 }
 0x39c   : > { %v1213_v49 = vmul.f32 0.35355338, %v1207_v48  ;;  %v2858_v50 = vpop.f32.mrb[13].mxu1 }
 0x39d   : > { %v1210_v51 = vpop.f32.mrb[14].mxu1 }
 0x39e   : > { %v2859_v52 = vpop.f32.mrb[15].mxu1  ;;  %v1214_v53 = vadd.f32 %v1213_v49, %v840_v34 }
 0x3a0   : > { %v1215_v54 = vsel %vm932_vm3, %v1214_v53, -inf }
 0x3a1   : > { %1216 = vmax.xlane.f32.xlu0 %v1215_v54 }
 0x3a3   : > { %v1325_v56 = vpop.f32.mrb[16].mxu1 }
 0x3a4   : > { %v1331_v57 = vmul.f32 0.35355338, %v1325_v56  ;;  %v2870_v58 = vpop.f32.mrb[17].mxu1 }
 0x3a5   : > { %v1328_v59 = vpop.f32.mrb[18].mxu1 }
 0x3a6   : > { %v2871_v60 = vpop.f32.mrb[19].mxu1  ;;  %v1332_v61 = vadd.f32 %v1331_v57, %v840_v34 }
 0x3a8   : > { %v1333_v63 = vsel %vm932_vm3, %v1332_v61, -inf }
 0x3a9   : > { %1334 = vmax.xlane.f32.xlu0 %v1333_v63  ;;  %v3139_v63 = vld [vmem:[%s4181_s1 + $0x8] sm:$0xff]  }
 0x3aa   : > { %922 = vrot.lane.b32.xlu1 %v920_v62, %s3596_s6  ;;  %v3138_v62 = vld [vmem:[%s4181_s1] sm:$0xff]   ;;  %s4699_s1 = scalar_lea.vmem [#allocation12], %s4151_s26 }
 0x3ab   : > { %2879 = vmatpush3.bf16.msra.mxu1 %v3138_v62  ;;  %s4700_s21 = smov %s4699_s1 }
 0x3ac   : > { %2880 = vmatprep.subr.bf16.mxu1 %v3586_v3 }
 0x3af   : > { %2881 = vmatpush3.bf16.msra.mxu1 %v3139_v63 }
 0x3b0   : > { %2894 = vmatprep.subr.bf16.mxu1 %v3586_v3 }
 0x41e   : > { %v983_v0 = vpop.xlane.xlu0 %982 }
 0x41f   : > { %v984_v1 = vsub.f32 %v980_v39, %v983_v0 }
 0x421   : > { %v985_v2 = vmul.f32 1.442695, %v984_v1 }
 0x423   : > { %3152 = vpow2.f32 %v985_v2 }
 0x426   : > { %v1099_v4 = vpop.xlane.xlu1 %1098 }
 0x427   : > { %v1100_v9 = vsub.f32 %v1096_v46, %v1099_v4 }
 0x429   : > { %v1101_v10 = vmul.f32 1.442695, %v1100_v9 }
 0x42a   : > { %v923_v12 = vpop.permute.xlu1 %922 }
 0x42b   : > { %3154 = vpow2.f32 %v1101_v10  ;;  %v925_v13 = vadd.f32 %v923_v12, %v4236_v14 }
 0x42d   : > { %v3153_v15 = vpop.eup %3152  ;;  %v928_v16 = vpack.c.bf16 %v925_v13, %v925_v13 }
 0x42e   : > { %v1217_v17 = vpop.xlane.xlu0 %1216  ;;  %v987_v18 = vsel %vm932_vm3, %v3153_v15, 0.0 }
 0x42f   : > { %v1218_v19 = vsub.f32 %v1214_v53, %v1217_v17  ;;  %994 = vrot.lane.b32.xlu1 %v928_v16, %s3596_s6  ;;  %988 = vadd.xlane.f32.xlu0 %v987_v18  ;;  %s4701_s6 = scalar_lea.vmem [#allocation7], %s4130_s5 }
 0x431   : > { %v1219_v20 = vmul.f32 1.442695, %v1218_v19 }
 0x433   : > { %3156 = vpow2.f32 %v1219_v20  ;;  %1227 = vrot.lane.b32.xlu1 %v928_v16, %s3597_s17  ;;  %v1407_v20 = vsub.s32 3, %v4211_v6  ;;  %s4702_s17 = scalar_lea.vmem [#allocation16], %s4151_s26 }
 0x435   : > { %v3155_v21 = vpop.eup %3154 }
 0x436   : > { %v1335_v22 = vpop.xlane.xlu0 %1334  ;;  %v1103_v23 = vsel %vm932_vm3, %v3155_v21, 0.0 }
 0x437   : > { %v1336_v24 = vsub.f32 %v1332_v61, %v1335_v22  ;;  %1345 = vrot.lane.b32.xlu1 %v928_v16, %s3598_s19  ;;  %1104 = vadd.xlane.f32.xlu0 %v1103_v23 }
 0x439   : > { %v1337_v14 = vmul.f32 1.442695, %v1336_v24 }
 0x43b   : > { %3158 = vpow2.f32 %v1337_v14 }
 0x43d   : > { %v3157_v25 = vpop.eup %3156 }
 0x43e   : > { %v1221_v26 = vsel %vm932_vm3, %v3157_v25, 0.0 }
 0x43f   : > { %1222 = vadd.xlane.f32.xlu0 %v1221_v26 }
 0x445   : > { %v3159_v27 = vpop.eup %3158 }
 0x446   : > { %v1339_v28 = vsel %vm932_vm3, %v3159_v27, 0.0 }
 0x447   : > { %1340 = vadd.xlane.f32.xlu0 %v1339_v28 }
 0x45d   : > { %1109 = vrot.lane.b32.xlu0 %v928_v16, %s3599_s18 }
 0x4a1   : > { %v995_v29 = vpop.permute.xlu1 %994 }
 0x4a2   : > { %v1001_v30 = vsel %vm999_vm4, %v995_v29, 0 }
 0x4a3   : > { %2837 = vmatpush3.bf16.msra.mxu0 %v1001_v30 }
 0x4a4   : > { %2848 = vmatprep.subr.bf16.mxu0 %v3586_v3 }
 0x4a5   : > { %v1228_v42 = vpop.permute.xlu1 %1227 }
 0x4a6   : > { %v1233_v45 = vsel %vm999_vm4, %v1228_v42, 0 }
 0x4a9   : > { %v1346_v47 = vpop.permute.xlu1 %1345 }
 0x4aa   : > { %v1351_v50 = vsel %vm999_vm4, %v1346_v47, 0 }
 0x4bc   : > { %v989_v31 = vpop.xlane.xlu0 %988 }
 0x4bd   : > { %3160 = vrcp.f32 %v989_v31 }
 0x4c4   : > { %v1105_v33 = vpop.xlane.xlu0 %1104 }
 0x4c5   : > { %3162 = vrcp.f32 %v1105_v33  ;;  %v3140_v33 = vld [vmem:[%s4699_s1] sm:$0xff]  }
 0x4c7   : > { %v3161_v32 = vpop.eup %3160 }
 0x4c8   : > { %v991_v34 = vmul.f32 %v3161_v32, %v3153_v15 }
 0x4ca   : > { %v992_v35 = vpack.c.bf16 %v991_v34, %v991_v34  ;;  %v3141_v34 = vld [vmem:[%s4700_s21 + $0x8] sm:$0xff]  }
 0x4cc   : > { %2839 = vmatmul.mubr.msk.bf16.vlgmr.msra.gmra.mrb[0].mxu0 %vm932_vm3, %v992_v35  ;;  %v1223_v36 = vpop.xlane.xlu0 %1222 }
 0x4cd   : > { %2850 = vmatprep.mubr.msk.bf16.mxu0 %vm3587_vm1, %v3586_v3  ;;  %3164 = vrcp.f32 %v1223_v36  ;;  %v3142_v36 = vld [vmem:[%s4186_s29] sm:$0xff]  }
 0x4cf   : > { %v3163_v37 = vpop.eup %3162 }
 0x4d0   : > { %v1107_v39 = vmul.f32 %v3163_v37, %v3155_v21  ;;  %v1408_v21 = vrot.slane %v4209_v5, %v1407_v20  ;;  %v3143_v37 = vld [vmem:[%s4186_s29 + $0x8] sm:$0xff]   ;;  %s4703_s29 = scalar_lea.vmem [#allocation10], %s4130_s5 }
 0x4d2   : > { %v1108_v43 = vpack.c.bf16 %v1107_v39, %v1107_v39 }
 0x4d4   : > { %v1341_v38 = vpop.xlane.xlu0 %1340 }
 0x4d5   : > { %3166 = vrcp.f32 %v1341_v38 }
 0x4d7   : > { %v3165_v44 = vpop.eup %3164 }
 0x4d8   : > { %v1110_v40 = vpop.permute.xlu0 %1109  ;;  %v1225_v46 = vmul.f32 %v3165_v44, %v3157_v25 }
 0x4d9   : > { %v1115_v41 = vsel %vm999_vm4, %v1110_v40, 0 }
 0x4da   : > { %2849 = vmatpush3.bf16.msra.mxu0 %v1115_v41  ;;  %v1226_v48 = vpack.c.bf16 %v1225_v46, %v1225_v46  ;;  %v4340_v41 = vld [vmem:[%s4702_s17 + $0x8] sm:$0xff] }
 0x4db   : > { %2860 = vmatprep.subr.bf16.mxu0 %v3586_v3  ;;  %v1482_v42 = vrot.slane %v4340_v41, %v905_v11  ;;  %v1487_v44 = vrot.slane %v4340_v41, %v910_v8 }
 0x4dd   : > { %2851 = vmatmul.mubr.msk.bf16.vlgmr.msra.gmra.mrb[4].mxu0 %vm932_vm3, %v1108_v43 }
 0x4de   : > { %2861 = vmatpush3.bf16.msra.mxu0 %v1233_v45  ;;  %2862 = vmatprep.mubr.msk.bf16.mxu0 %vm3587_vm1, %v3586_v3 }
 0x4df   : > { %2872 = vmatprep.subr.bf16.mxu0 %v3586_v3  ;;  %v3167_v49 = vpop.eup %3166 }
 0x4e0   : > { %v1343_v51 = vmul.f32 %v3167_v49, %v3159_v27  ;;  %v1615_v49 = vsub.s32 5, %v4211_v6 }
 0x4e2   : > { %v1344_v52 = vpack.c.bf16 %v1343_v51, %v1343_v51  ;;  %v1616_v11 = vrot.slane %v4209_v5, %v1615_v49 }
 0x4e5   : > { %2863 = vmatmul.mubr.msk.bf16.vlgmr.msra.gmra.mrb[8].mxu0 %vm932_vm3, %v1226_v48 }
 0x4e6   : > { %2873 = vmatpush3.bf16.msra.mxu0 %v1351_v50  ;;  %2874 = vmatprep.mubr.msk.bf16.mxu0 %vm3587_vm1, %v3586_v3 }
 0x4e7   : > { %2886 = vmatprep.subr.bf16.mxu0 %v3586_v3 }
 0x4ed   : > { %2875 = vmatmul.mubr.msk.bf16.vlgmr.msra.gmra.mrb[12].mxu0 %vm932_vm3, %v1344_v52 }
 0x4ee   : > { %2890 = vmatprep.mubr.msk.bf16.mxu0 %vm3587_vm1, %v3586_v3  ;;  %2887 = vmatpush3.bf16.msra.mxu0 %v3142_v36 }
 0x4ef   : > { %2888 = vmatprep.subr.bf16.mxu0 %v3586_v3 }
 0x4f2   : > { %2889 = vmatpush3.bf16.msra.mxu0 %v3143_v37 }
 0x4f3   : > { %2902 = vmatprep.subr.bf16.mxu0 %v3586_v3 }
 0x59f   : > { %v1037_v53 = vpop.f32.mrb[0].mxu0 }
 0x5a0   : > { %1043 = vst.msk [vmem:[#allocation3] sm:$0xff] %vm932_vm3, %v1037_v53  ;;  %v2840_v54 = vpop.f32.mrb[1].mxu0 }
 0x5a1   : > { %v1040_v56 = vpop.f32.mrb[2].mxu0 }
 0x5a2   : > { %v2841_v57 = vpop.f32.mrb[3].mxu0 }
 0x5a3   : > { %v1496_v57 = vsub.s32 4, %v4211_v6 }
 0x5b0   : > { %v1151_v58 = vpop.f32.mrb[4].mxu0 }
 0x5b1   : > { %1158 = vrot.lane.b32.xlu1 %v1151_v58, %s3600_s28  ;;  %v2852_v59 = vpop.f32.mrb[5].mxu0  ;;  %v1497_v58 = vrot.slane %v4209_v5, %v1496_v57 }
 0x5b2   : > { %v1154_v60 = vpop.f32.mrb[6].mxu0 }
 0x5b3   : > { %v2853_v61 = vpop.f32.mrb[7].mxu0 }
 0x5b8   : > { %v1269_v0 = vpop.f32.mrb[8].mxu0 }
 0x5b9   : > { %1276 = vrot.lane.b32.xlu1 %v1269_v0, %s3601_s0  ;;  %v2864_v1 = vpop.f32.mrb[9].mxu0 }
 0x5ba   : > { %v1272_v2 = vpop.f32.mrb[10].mxu0 }
 0x5bb   : > { %v2865_v4 = vpop.f32.mrb[11].mxu0 }
 0x5c0   : > { %v1387_v9 = vpop.f32.mrb[12].mxu0 }
 0x5c1   : > { %1394 = vrot.lane.b32.xlu1 %v1387_v9, %s3602_s2  ;;  %v2876_v10 = vpop.f32.mrb[13].mxu0 }
 0x5c2   : > { %v1390_v12 = vpop.f32.mrb[14].mxu0 }
 0x5c3   : > { %v2877_v13 = vpop.f32.mrb[15].mxu0 }
 0x623   : > { %v1159_v15 = vpop.permute.xlu1 %1158 }
 0x624   : > { %1162 = vst.msk [vmem:[#allocation3] sm:$0xff] %vm1161_vm5, %v1159_v15 }
 0x62b   : > { %v1277_v16 = vpop.permute.xlu1 %1276 }
 0x62c   : > { %1280 = vst.msk [vmem:[#allocation3] sm:$0xff] %vm1279_vm6, %v1277_v16 }
 0x633   : > { %v1395_v17 = vpop.permute.xlu1 %1394 }
 0x634   : > { %1398 = vst.msk [vmem:[#allocation3] sm:$0xff] %vm1397_vm7, %v1395_v17 }
 0x63b   : > { %v1399_v18 = vld [vmem:[#allocation3] sm:$0xff] }
 0x63c   : > { %v1400_v19 = vpack.c.bf16 %v1399_v18, %v1399_v18  ;;  %v841_v18 = vld [vmem:[%s4703_s29] sm:$0xff] }
 0x63e   : > { %2883 = vmatmul.mubr.msk.bf16.vlgmr.msra.gmra.mrb[20].mxu1 %vm859_vm2, %v1400_v19 }
 0x63f   : > { %2898 = vmatprep.mubr.msk.bf16.mxu1 %vm3587_vm1, %v3586_v3  ;;  %2895 = vmatpush3.bf16.msra.mxu1 %v3140_v33 }
 0x640   : > { %2896 = vmatprep.subr.bf16.mxu1 %v3586_v3 }
 0x643   : > { %2897 = vmatpush3.bf16.msra.mxu1 %v3141_v34 }
 0x644   : > { %2908 = vmatprep.subr.bf16.mxu1 %v3586_v3 }
 0x711   : > { %v1458_v22 = vpop.f32.mrb[20].mxu1 }
 0x712   : > { %v1459_v23 = vadd.f32 %v1458_v22, %v1408_v21  ;;  %v2884_v24 = vpop.f32.mrb[21].mxu1 }
 0x713   : > { %v1461_v14 = vpop.f32.mrb[22].mxu1 }
 0x714   : > { %v2885_v25 = vpop.f32.mrb[23].mxu1  ;;  %v1464_v26 = vadd.f32 %v1459_v23, %v4219_v7  ;;  %v837_v7 = vld [vmem:[%s4701_s6] sm:$0xff] }
 0x715   : > { %v1553_v35 = vpack.c.bf16 %v837_v7, %v837_v7 }
 0x716   : > { %v1465_v27 = vsel %vm859_vm2, %v1464_v26, 0.0 }
 0x717   : > { %1466 = vadd.xlane.f32.xlu0 %v1465_v27  ;;  %2899 = vmatmul.mubr.msk.bf16.vlgmr.msra.gmra.mrb[24].mxu1 %vm859_vm2, %v1553_v35 }
 0x718   : > { %2910 = vmatprep.mubr.msk.bf16.mxu1 %vm3587_vm1, %v3586_v3 }
 0x7a4   : > { %v1467_v28 = vpop.xlane.xlu0 %1466 }
 0x7a5   : > { %v1469_v29 = vmul.f32 0.03125, %v1467_v28 }
 0x7a7   : > { %v1470_v30 = vsub.f32 %v1464_v26, %v1469_v29 }
 0x7a9   : > { %v1471_v31 = vmul.f32 %v1470_v30, %v1470_v30 }
 0x7ab   : > { %v1472_v32 = vsel %vm859_vm2, %v1471_v31, 0.0 }
 0x7ac   : > { %1473 = vadd.xlane.f32.xlu1 %v1472_v32 }
 0x7ea   : > { %v4359_v50 = vpop.f32.mrb[24].mxu1 }
 0x7eb   : > { %v1617_v8 = vadd.f32 %v1616_v11, %v4359_v50  ;;  %v2900_v51 = vpop.f32.mrb[25].mxu1 }
 0x7ec   : > { %v1610_v52 = vpop.f32.mrb[26].mxu1 }
 0x7ed   : > { %v1628_v53 = vpack.c.bf16 %v1617_v8, %v1617_v8  ;;  %v2901_v54 = vpop.f32.mrb[27].mxu1 }
 0x7ef   : > { %1744 = vrot.lane.b32.xlu0 %v1628_v53, %s3592_s16  ;;  %v1634_v56 = vsel %vm932_vm3, %v1628_v53, 0 }
 0x7f3   : > { %1861 = vrot.lane.b32.xlu0 %v1628_v53, %s3594_s23 }
 0x7f7   : > { %1978 = vrot.lane.b32.xlu0 %v1628_v53, %s3595_s25 }
 0x839   : > { %v1474_v38 = vpop.xlane.xlu1 %1473 }
 0x83a   : > { %v1475_v39 = vmul.f32 0.03125, %v1474_v38  ;;  %v1620_v38 = vsub.s32 6, %v4211_v6 }
 0x83c   : > { %v1476_v40 = vadd.f32 1e-06, %v1475_v39 }
 0x83e   : > { %3168 = vrsqrt.f32 %v1476_v40 }
 0x848   : > { %v3169_v43 = vpop.eup %3168 }
 0x849   : > { %v1478_v45 = vmul.f32 %v3169_v43, %v1470_v30 }
 0x84b   : > { %v1483_v46 = vmul.f32 %v1482_v42, %v1478_v45 }
 0x84d   : > { %v4348_v47 = vadd.f32 %v1487_v44, %v1483_v46  ;;  %v1621_v46 = vrot.slane %v4209_v5, %v1620_v38 }
 0x84f   : > { %v1489_v48 = vpack.c.bf16 %v4348_v47, %v4348_v47 }
 0x851   : > { %2891 = vmatmul.mubr.msk.bf16.vlgmr.msra.gmra.mrb[16].mxu0 %vm859_vm2, %v1489_v48 }
 0x852   : > { %2904 = vmatprep.mubr.msk.bf16.mxu0 %vm3587_vm1, %v3586_v3  ;;  %2903 = vmatpush3.bf16.xpose.msra.mxu0 %v1634_v56 }
 0x853   : > { %2914 = vmatprep.subr.bf16.mxu0 %v3586_v3 }
 0x861   : > { %v1745_v63 = vpop.permute.xlu0 %1744 }
 0x862   : > { %v1750_v2 = vsel %vm932_vm3, %v1745_v63, 0 }
 0x865   : > { %v1862_v4 = vpop.permute.xlu0 %1861 }
 0x866   : > { %v1867_v10 = vsel %vm932_vm3, %v1862_v4, 0 }
 0x869   : > { %v1979_v12 = vpop.permute.xlu0 %1978 }
 0x86a   : > { %v1984_v15 = vsel %vm932_vm3, %v1979_v12, 0 }
 0x924   : > { %v1547_v59 = vpop.f32.mrb[16].mxu0 }
 0x925   : > { %v1548_v60 = vadd.f32 %v1547_v59, %v1497_v58  ;;  %v2892_v61 = vpop.f32.mrb[17].mxu0 }
 0x926   : > { %v1550_v62 = vpop.f32.mrb[18].mxu0 }
 0x927   : > { %v1627_v0 = vpack.c.bf16 %v1548_v60, %v1548_v60  ;;  %v2893_v1 = vpop.f32.mrb[19].mxu0 }
 0x929   : > { %1741 = vrot.lane.b32.xlu1 %v1627_v0, %s3592_s16  ;;  %2905 = vmatmul.mubr.msk.bf16.vlgmr.msra.gmra.mrb[20].mxu0 %vm932_vm3, %v1627_v0 }
 0x92a   : > { %2915 = vmatpush3.bf16.xpose.msra.mxu0 %v1750_v2  ;;  %2916 = vmatprep.mubr.msk.bf16.mxu0 %vm3587_vm1, %v3586_v3 }
 0x92b   : > { %2926 = vmatprep.subr.bf16.mxu0 %v3586_v3 }
 0x92d   : > { %1859 = vrot.lane.b32.xlu1 %v1627_v0, %s3594_s23 }
 0x931   : > { %1976 = vrot.lane.b32.xlu1 %v1627_v0, %s3595_s25 }
 0x99b   : > { %v1742_v9 = vpop.permute.xlu1 %1741 }
 0x99c   : > { %2917 = vmatmul.mubr.msk.bf16.vlgmr.msra.gmra.mrb[24].mxu0 %vm932_vm3, %v1742_v9 }
 0x99d   : > { %2927 = vmatpush3.bf16.xpose.msra.mxu0 %v1867_v10  ;;  %2928 = vmatprep.mubr.msk.bf16.mxu0 %vm3587_vm1, %v3586_v3 }
 0x99e   : > { %2938 = vmatprep.subr.bf16.mxu0 %v3586_v3 }
 0x99f   : > { %v1860_v13 = vpop.permute.xlu1 %1859 }
 0x9a3   : > { %v1977_v16 = vpop.permute.xlu1 %1976 }
 0x9a4   : > { %2929 = vmatmul.mubr.msk.bf16.vlgmr.msra.gmra.mrb[28].mxu0 %vm932_vm3, %v1860_v13 }
 0x9a5   : > { %2939 = vmatpush3.bf16.xpose.msra.mxu0 %v1984_v15  ;;  %2940 = vmatprep.mubr.msk.bf16.mxu0 %vm3587_vm1, %v3586_v3 }
 0x9a6   : > { %2950 = vmatprep.subr.bf16.mxu0 %v3586_v3 }
 0x9ac   : > { %2941 = vmatmul.mubr.msk.bf16.vlgmr.msra.gmra.mrb[32].mxu0 %vm932_vm3, %v1977_v16 }
 0x9ad   : > { %2954 = vmatprep.mubr.msk.bf16.mxu0 %vm3587_vm1, %v3586_v3 }
 0x9fc   : > { %v1670_v17 = vpop.f32.mrb[20].mxu0 }
 0x9fd   : > { %v1676_v19 = vmul.f32 0.35355338, %v1670_v17  ;;  %v2906_v21 = vpop.f32.mrb[21].mxu0 }
 0x9fe   : > { %v1673_v22 = vpop.f32.mrb[22].mxu0 }
 0x9ff   : > { %v2907_v23 = vpop.f32.mrb[23].mxu0  ;;  %v1677_v24 = vadd.f32 %v1676_v19, %v841_v18 }
 0xa01   : > { %v1678_v14 = vsel %vm932_vm3, %v1677_v24, -inf }
 0xa02   : > { %1679 = vmax.xlane.f32.xlu0 %v1678_v14 }
 0xa6f   : > { %v1786_v25 = vpop.f32.mrb[24].mxu0 }
 0xa70   : > { %v1792_v26 = vmul.f32 0.35355338, %v1786_v25  ;;  %v2918_v27 = vpop.f32.mrb[25].mxu0 }
 0xa71   : > { %v1789_v28 = vpop.f32.mrb[26].mxu0 }
 0xa72   : > { %v2919_v29 = vpop.f32.mrb[27].mxu0  ;;  %v1793_v30 = vadd.f32 %v1792_v26, %v841_v18 }
 0xa74   : > { %v1794_v31 = vsel %vm932_vm3, %v1793_v30, -inf }
 0xa75   : > { %1795 = vmax.xlane.f32.xlu1 %v1794_v31 }
 0xa77   : > { %v1903_v32 = vpop.f32.mrb[28].mxu0 }
 0xa78   : > { %v1909_v33 = vmul.f32 0.35355338, %v1903_v32  ;;  %v2930_v34 = vpop.f32.mrb[29].mxu0 }
 0xa79   : > { %v1906_v7 = vpop.f32.mrb[30].mxu0 }
 0xa7a   : > { %v2931_v35 = vpop.f32.mrb[31].mxu0  ;;  %v1910_v36 = vadd.f32 %v1909_v33, %v841_v18 }
 0xa7c   : > { %v1911_v37 = vsel %vm932_vm3, %v1910_v36, -inf }
 0xa7d   : > { %1912 = vmax.xlane.f32.xlu0 %v1911_v37 }
 0xa7f   : > { %v2020_v39 = vpop.f32.mrb[32].mxu0 }
 0xa80   : > { %v2026_v40 = vmul.f32 0.35355338, %v2020_v39  ;;  %v2942_v42 = vpop.f32.mrb[33].mxu0 }
 0xa81   : > { %v2023_v43 = vpop.f32.mrb[34].mxu0 }
 0xa82   : > { %v2943_v44 = vpop.f32.mrb[35].mxu0  ;;  %v2027_v45 = vadd.f32 %v2026_v40, %v841_v18 }
 0xa84   : > { %v2028_v48 = vsel %vm932_vm3, %v2027_v45, -inf }
 0xa85   : > { %2029 = vmax.xlane.f32.xlu0 %v2028_v48 }
 0xa86   : > { %1623 = vrot.lane.b32.xlu1 %v1621_v46, %s3588_s3  ;;  %s4704_s3 = scalar_lea.vmem [#allocation13], %s4151_s26 }
 0xa8f   : > { %v1680_v11 = vpop.xlane.xlu0 %1679 }
 0xa90   : > { %v1681_v8 = vsub.f32 %v1677_v24, %v1680_v11 }
 0xa92   : > { %v1682_v51 = vmul.f32 1.442695, %v1681_v8  ;;  %v3144_v8 = vld [vmem:[%s4704_s3] sm:$0xff]  }
 0xa93   : > { %2951 = vmatpush3.bf16.msra.mxu0 %v3144_v8 }
 0xa94   : > { %3170 = vpow2.f32 %v1682_v51  ;;  %2952 = vmatprep.subr.bf16.mxu0 %v3586_v3 }
 0xa9e   : > { %v3171_v52 = vpop.eup %3170 }
 0xa9f   : > { %v1684_v53 = vsel %vm932_vm3, %v3171_v52, 0.0 }
 0xaa0   : > { %1685 = vadd.xlane.f32.xlu0 %v1684_v53 }
 0xb02   : > { %v1796_v54 = vpop.xlane.xlu1 %1795 }
 0xb03   : > { %v1797_v56 = vsub.f32 %v1793_v30, %v1796_v54 }
 0xb05   : > { %v1798_v58 = vmul.f32 1.442695, %v1797_v56 }
 0xb06   : > { %v1624_v59 = vpop.permute.xlu1 %1623 }
 0xb07   : > { %3172 = vpow2.f32 %v1798_v58  ;;  %v1626_v60 = vadd.f32 %v1624_v59, %v4359_v50 }
 0xb09   : > { %v1629_v61 = vpack.c.bf16 %v1626_v60, %v1626_v60 }
 0xb0a   : > { %v1913_v62 = vpop.xlane.xlu0 %1912 }
 0xb0b   : > { %v1914_v63 = vsub.f32 %v1910_v36, %v1913_v62  ;;  %1691 = vrot.lane.b32.xlu1 %v1629_v61, %s3590_s8  ;;  %s4706_s8 = scalar_lea.vmem [#allocation15], %s4151_s26 }
 0xb0d   : > { %v1915_v0 = vmul.f32 1.442695, %v1914_v63 }
 0xb0f   : > { %3174 = vpow2.f32 %v1915_v0  ;;  %1923 = vrot.lane.b32.xlu1 %v1629_v61, %s3591_s20  ;;  %s4707_s20 = smov %s4706_s8 }
 0xb11   : > { %v3173_v1 = vpop.eup %3172 }
 0xb12   : > { %v2030_v2 = vpop.xlane.xlu0 %2029  ;;  %v1800_v4 = vsel %vm932_vm3, %v3173_v1, 0.0 }
 0xb13   : > { %v2031_v9 = vsub.f32 %v2027_v45, %v2030_v2  ;;  %2040 = vrot.lane.b32.xlu1 %v1629_v61, %s3593_s15  ;;  %1801 = vadd.xlane.f32.xlu0 %v1800_v4  ;;  %v2101_v4 = vsub.s32 7, %v4211_v6 }
 0xb15   : > { %v2032_v10 = vmul.f32 1.442695, %v2031_v9  ;;  %v2102_v9 = vrot.slane %v4209_v5, %v2101_v4  ;;  %v3146_v5 = vld [vmem:[%s4706_s8] sm:$0xff]  }
 0xb17   : > { %3176 = vpow2.f32 %v2032_v10 }
 0xb19   : > { %v3175_v50 = vpop.eup %3174 }
 0xb1a   : > { %v1917_v12 = vsel %vm932_vm3, %v3175_v50, 0.0 }
 0xb1b   : > { %1918 = vadd.xlane.f32.xlu0 %v1917_v12 }
 0xb21   : > { %v3177_v13 = vpop.eup %3176 }
 0xb22   : > { %v2034_v15 = vsel %vm932_vm3, %v3177_v13, 0.0 }
 0xb23   : > { %2035 = vadd.xlane.f32.xlu0 %v2034_v15 }
 0xb2d   : > { %v1686_v16 = vpop.xlane.xlu0 %1685 }
 0xb2e   : > { %3178 = vrcp.f32 %v1686_v16 }
 0xb38   : > { %v3179_v17 = vpop.eup %3178 }
 0xb39   : > { %1806 = vrot.lane.b32.xlu0 %v1629_v61, %s3589_s4  ;;  %v1688_v18 = vmul.f32 %v3179_v17, %v3171_v52  ;;  %s4705_s4 = smov %s4704_s3 }
 0xb3a   : > { %v3145_v51 = vld [vmem:[%s4705_s4 + $0x8] sm:$0xff]  }
 0xb3b   : > { %v1689_v22 = vpack.c.bf16 %v1688_v18, %v1688_v18  ;;  %2953 = vmatpush3.bf16.msra.mxu0 %v3145_v51 }
 0xb3c   : > { %2966 = vmatprep.subr.bf16.mxu0 %v3586_v3 }
 0xb7d   : > { %v1692_v19 = vpop.permute.xlu1 %1691 }
 0xb7e   : > { %v1697_v21 = vsel %vm999_vm4, %v1692_v19, 0 }
 0xb7f   : > { %2909 = vmatpush3.bf16.msra.mxu1 %v1697_v21 }
 0xb80   : > { %2920 = vmatprep.subr.bf16.mxu1 %v3586_v3 }
 0xb81   : > { %v1924_v29 = vpop.permute.xlu1 %1923 }
 0xb82   : > { %2911 = vmatmul.mubr.msk.bf16.vlgmr.msra.gmra.mrb[28].mxu1 %vm932_vm3, %v1689_v22  ;;  %v1929_v32 = vsel %vm999_vm4, %v1924_v29, 0 }
 0xb83   : > { %2922 = vmatprep.mubr.msk.bf16.mxu1 %vm3587_vm1, %v3586_v3 }
 0xb85   : > { %v2041_v34 = vpop.permute.xlu1 %2040 }
 0xb86   : > { %v2046_v36 = vsel %vm999_vm4, %v2041_v34, 0 }
 0xba0   : > { %v1802_v23 = vpop.xlane.xlu0 %1801 }
 0xba1   : > { %3180 = vrcp.f32 %v1802_v23 }
 0xba8   : > { %v1919_v24 = vpop.xlane.xlu0 %1918 }
 0xba9   : > { %3182 = vrcp.f32 %v1919_v24  ;;  %v3147_v24 = vld [vmem:[%s4707_s20 + $0x8] sm:$0xff]  }
 0xbab   : > { %v3181_v14 = vpop.eup %3180 }
 0xbac   : > { %v1804_v26 = vmul.f32 %v3181_v14, %v3173_v1  ;;  %v3149_v14 = vld [vmem:[%s4191_s13 + $0x8] sm:$0xff]  }
 0xbae   : > { %v1805_v30 = vpack.c.bf16 %v1804_v26, %v1804_v26 }
 0xbb0   : > { %v2036_v25 = vpop.xlane.xlu0 %2035 }
 0xbb1   : > { %3184 = vrcp.f32 %v2036_v25 }
 0xbb3   : > { %v3183_v31 = vpop.eup %3182 }
 0xbb4   : > { %v1807_v27 = vpop.permute.xlu0 %1806  ;;  %v1921_v33 = vmul.f32 %v3183_v31, %v3175_v50 }
 0xbb5   : > { %v1812_v28 = vsel %vm999_vm4, %v1807_v27, 0 }
 0xbb6   : > { %2921 = vmatpush3.bf16.msra.mxu1 %v1812_v28  ;;  %v1922_v7 = vpack.c.bf16 %v1921_v33, %v1921_v33  ;;  %v2175_v28 = vrot.slane %v4340_v41, %v919_v55  ;;  %v2745_v55 = vld [vmem:[%s823_s24] ss:$0 sm:$0xff] }
 0xbb7   : > { %2932 = vmatprep.subr.bf16.mxu1 %v3586_v3 }
 0xbb9   : > { %2923 = vmatmul.mubr.msk.bf16.vlgmr.msra.gmra.mrb[32].mxu1 %vm932_vm3, %v1805_v30  ;;  %v2180_v30 = vrot.slane %v4340_v41, %v1407_v20 }
 0xbba   : > { %2933 = vmatpush3.bf16.msra.mxu1 %v1929_v32  ;;  %2934 = vmatprep.mubr.msk.bf16.mxu1 %vm3587_vm1, %v3586_v3 }
 0xbbb   : > { %2944 = vmatprep.subr.bf16.mxu1 %v3586_v3  ;;  %v3185_v35 = vpop.eup %3184 }
 0xbbc   : > { %v2038_v37 = vmul.f32 %v3185_v35, %v3177_v13  ;;  %v3151_v35 = vld [vmem:[%s4191_s13 + $0x18] sm:$0xff]  }
 0xbbe   : > { %v2039_v39 = vpack.c.bf16 %v2038_v37, %v2038_v37 }
 0xbc1   : > { %2935 = vmatmul.mubr.msk.bf16.vlgmr.msra.gmra.mrb[36].mxu1 %vm932_vm3, %v1922_v7  ;;  %v3150_v7 = vld [vmem:[%s4191_s13 + $0x10] sm:$0xff]  }
 0xbc2   : > { %2945 = vmatpush3.bf16.msra.mxu1 %v2046_v36  ;;  %2946 = vmatprep.mubr.msk.bf16.mxu1 %vm3587_vm1, %v3586_v3 }
 0xbc3   : > { %2958 = vmatprep.subr.bf16.mxu1 %v3586_v3 }
 0xbc9   : > { %2947 = vmatmul.mubr.msk.bf16.vlgmr.msra.gmra.mrb[40].mxu1 %vm932_vm3, %v2039_v39 }
 0xbca   : > { %2962 = vmatprep.mubr.msk.bf16.mxu1 %vm3587_vm1, %v3586_v3  ;;  %2959 = vmatpush3.bf16.msra.mxu1 %v3146_v5 }
 0xbcb   : > { %2960 = vmatprep.subr.bf16.mxu1 %v3586_v3 }
 0xbce   : > { %2961 = vmatpush3.bf16.msra.mxu1 %v3147_v24 }
 0xc55   : > { %v1733_v40 = vpop.f32.mrb[28].mxu1 }
 0xc56   : > { %1739 = vst.msk [vmem:[#allocation3] sm:$0xff] %vm932_vm3, %v1733_v40  ;;  %v2912_v42 = vpop.f32.mrb[29].mxu1 }
 0xc57   : > { %v1736_v43 = vpop.f32.mrb[30].mxu1 }
 0xc58   : > { %v2913_v44 = vpop.f32.mrb[31].mxu1 }
 0xc8c   : > { %v1848_v45 = vpop.f32.mrb[32].mxu1 }
 0xc8d   : > { %1855 = vrot.lane.b32.xlu1 %v1848_v45, %s3600_s28  ;;  %v2924_v46 = vpop.f32.mrb[33].mxu1 }
 0xc8e   : > { %v1851_v48 = vpop.f32.mrb[34].mxu1 }
 0xc8f   : > { %v2925_v11 = vpop.f32.mrb[35].mxu1 }
 0xc94   : > { %v1965_v52 = vpop.f32.mrb[36].mxu1 }
 0xc95   : > { %1972 = vrot.lane.b32.xlu1 %v1965_v52, %s3601_s0  ;;  %v2936_v53 = vpop.f32.mrb[37].mxu1 }
 0xc96   : > { %v1968_v54 = vpop.f32.mrb[38].mxu1 }
 0xc97   : > { %v2937_v56 = vpop.f32.mrb[39].mxu1 }
 0xc9c   : > { %v2082_v58 = vpop.f32.mrb[40].mxu1 }
 0xc9d   : > { %2089 = vrot.lane.b32.xlu1 %v2082_v58, %s3602_s2  ;;  %v2948_v59 = vpop.f32.mrb[41].mxu1 }
 0xc9e   : > { %v2085_v60 = vpop.f32.mrb[42].mxu1 }
 0xc9f   : > { %v2949_v61 = vpop.f32.mrb[43].mxu1 }
 0xca0   : > { %v2348_v61 = vrot.slane %v4340_v41, %v1496_v57 }
 0xcff   : > { %v1856_v62 = vpop.permute.xlu1 %1855 }
 0xd00   : > { %1858 = vst.msk [vmem:[#allocation3] sm:$0xff] %vm1161_vm5, %v1856_v62 }
 0xd07   : > { %v1973_v63 = vpop.permute.xlu1 %1972 }
 0xd08   : > { %1975 = vst.msk [vmem:[#allocation3] sm:$0xff] %vm1279_vm6, %v1973_v63  ;;  %v2353_v63 = vrot.slane %v4340_v41, %v1615_v49 }
 0xd0f   : > { %v2090_v0 = vpop.permute.xlu1 %2089 }
 0xd10   : > { %2092 = vst.msk [vmem:[#allocation3] sm:$0xff] %vm1397_vm7, %v2090_v0 }
 0xd17   : > { %v2093_v1 = vld [vmem:[#allocation3] sm:$0xff] }
 0xd18   : > { %v2094_v2 = vpack.c.bf16 %v2093_v1, %v2093_v1 }
 0xd1a   : > { %2955 = vmatmul.mubr.msk.bf16.vlgmr.msra.gmra.mrb[36].mxu0 %vm859_vm2, %v2094_v2 }
 0xd1b   : > { %2974 = vmatprep.mubr.msk.bf16.mxu0 %vm3587_vm1, %v3586_v3 }
 0xded   : > { %v2152_v10 = vpop.f32.mrb[36].mxu0 }
 0xdee   : > { %v2153_v50 = vadd.f32 %v2152_v10, %v2102_v9  ;;  %v2956_v12 = vpop.f32.mrb[37].mxu0 }
 0xdef   : > { %v2155_v13 = vpop.f32.mrb[38].mxu0 }
 0xdf0   : > { %v2957_v15 = vpop.f32.mrb[39].mxu0  ;;  %v2158_v16 = vadd.f32 %v2153_v50, %v4348_v47  ;;  %v3148_v47 = vld [vmem:[%s4191_s13] sm:$0xff]   ;;  %s4709_s13 = sld [smem:[#allocation30_spill]] }
 0xdf1   : > { %2967 = vmatpush3.bf16.msra.mxu0 %v3148_v47 }
 0xdf2   : > { %v2159_v17 = vsel %vm859_vm2, %v2158_v16, 0.0  ;;  %2968 = vmatprep.subr.bf16.mxu0 %v3586_v3 }
 0xdf3   : > { %2160 = vadd.xlane.f32.xlu0 %v2159_v17 }
 0xdf5   : > { %2969 = vmatpush3.bf16.msra.mxu0 %v3149_v14 }
 0xdf6   : > { %2970 = vmatprep.subr.bf16.mxu0 %v3586_v3  ;;  %p2754_p11 = scmp.ne.s32.totalorder %s4709_s13, 1 }
 0xdf9   : > { %2971 = vmatpush3.bf16.msra.mxu0 %v3150_v7 }
 0xdfa   : > { %2972 = vmatprep.subr.bf16.mxu0 %v3586_v3  ;;  %v2262_v3 = vrot.slane %v4340_v41, %v1620_v38 }
 0xdfd   : > { %2973 = vmatpush3.bf16.msra.mxu0 %v3151_v35 }
 0xe80   : > { %v2161_v18 = vpop.xlane.xlu0 %2160 }
 0xe81   : > { %v2162_v19 = vmul.f32 0.03125, %v2161_v18 }
 0xe83   : > { %v2163_v21 = vsub.f32 %v2158_v16, %v2162_v19 }
 0xe85   : > { %v2164_v22 = vmul.f32 %v2163_v21, %v2163_v21 }
 0xe87   : > { %v2165_v23 = vsel %vm859_vm2, %v2164_v22, 0.0 }
 0xe88   : > { %2166 = vadd.xlane.f32.xlu1 %v2165_v23 }
 0xf15   : > { %v2167_v25 = vpop.xlane.xlu1 %2166 }
 0xf16   : > { %v2168_v26 = vmul.f32 0.03125, %v2167_v25 }
 0xf18   : > { %v2169_v27 = vadd.f32 1e-06, %v2168_v26 }
 0xf1a   : > { %3186 = vrsqrt.f32 %v2169_v27 }
 0xf24   : > { %v3187_v29 = vpop.eup %3186 }
 0xf25   : > { %v2171_v31 = vmul.f32 %v3187_v29, %v2163_v21 }
 0xf27   : > { %v2176_v32 = vmul.f32 %v2175_v28, %v2171_v31 }
 0xf29   : > { %v2181_v33 = vadd.f32 %v2180_v30, %v2176_v32 }
 0xf2b   : > { %v2182_v34 = vpack.c.bf16 %v2181_v33, %v2181_v33 }
 0xf2d   : > { %2963 = vmatmul.mubr.msk.bf16.vlgmr.msra.gmra.mrb[44].mxu1 %vm859_vm2, %v2182_v34 }
0x1000   : > { %v2243_v36 = vpop.f32.mrb[44].mxu1 }
0x1001   : > { %v2244_v37 = vadd.f32 %v2745_v55, %v2243_v36  ;;  %v2964_v20 = vpop.f32.mrb[45].mxu1 }
0x1002   : > { %v2246_v39 = vpop.f32.mrb[46].mxu1 }
0x1003   : > { %v2249_v40 = vmax.f32 %v2244_v37, 0.0  ;;  %v2965_v42 = vpop.f32.mrb[47].mxu1 }
0x1005   : > { %v2250_v43 = vpack.c.bf16 %v2249_v40, %v2249_v40 }
0x1007   : > { %2975 = vmatmul.mubr.msk.bf16.vlgmr.msra.gmra.mrb[40].mxu0 %vm2287_vm8, %v2250_v43 }
0x10da   : > { %v2325_v44 = vpop.f32.mrb[40].mxu0 }
0x10db   : > { %v2326_v45 = vadd.f32 %v2325_v44, %v2262_v3  ;;  %v2976_v46 = vpop.f32.mrb[41].mxu0 }
0x10dc   : > { %v2328_v48 = vpop.f32.mrb[42].mxu0 }
0x10dd   : > { %v2977_v11 = vpop.f32.mrb[43].mxu0  ;;  %v2331_v8 = vadd.f32 %v2326_v45, %v2181_v33 }
0x10df   : > { %v2332_v51 = vsel %vm859_vm2, %v2331_v8, 0.0 }
0x10e0   : > { %2333 = vadd.xlane.f32.xlu0 %v2332_v51 }
0x116d   : > { %v2334_v52 = vpop.xlane.xlu0 %2333 }
0x116e   : > { %v2335_v53 = vmul.f32 0.03125, %v2334_v52 }
0x1170   : > { %v2336_v54 = vsub.f32 %v2331_v8, %v2335_v53 }
0x1172   : > { %v2337_v56 = vmul.f32 %v2336_v54, %v2336_v54 }
0x1174   : > { %v2338_v58 = vsel %vm859_vm2, %v2337_v56, 0.0 }
0x1175   : > { %2339 = vadd.xlane.f32.xlu0 %v2338_v58 }
0x1202   : > { %v2340_v59 = vpop.xlane.xlu0 %2339 }
0x1203   : > { %v2341_v60 = vmul.f32 0.03125, %v2340_v59 }
0x1205   : > { %v2342_v38 = vadd.f32 1e-06, %v2341_v60 }
0x1207   : > { %3188 = vrsqrt.f32 %v2342_v38 }
0x1211   : > { %v3189_v62 = vpop.eup %3188 }
0x1212   : > { %v2344_v0 = vmul.f32 %v3189_v62, %v2336_v54  ;;  %2359 = sbr.rel (%p2754_p11) target bundleno = 4633 (0x1219), region = 112 }
0x1214   : > { %v2349_v1 = vmul.f32 %v2348_v61, %v2344_v0 }
0x1216   : > { %v2354_v2 = vadd.f32 %v2353_v63, %v2349_v1 }
0x1218   : > { %2355 = vst.msk [vmem:[%s4216_s7] sm:$0xff] %vm859_vm2, %v2354_v2  ;;  %2360 = vst.msk [vmem:[%s800_s10] sm:$0xff] (!%p2754_p11), %vm859_vm2, %v2354_v2 }
0x1219 PF: > { %s4710_s14 = sld [smem:[#allocation29_spill]]  ;;  %s4711_s24 = sld [smem:[#allocation39_spill]] }
0x121a   : > { %s4712_s18 = sld [smem:[#allocation54_spill]]  ;;  %s2375_s7 = sshll.u32 %s800_s10, 4  ;;  %s2376_s7 = int_to_ptr.vmem [resolvable:$true] %s2375_s7 }
0x121b   : > { %s2362_s2 = scalar_lea.sflag [#allocation6], %s4127_s22  ;;  %s3430_s1 = scalar_lea.vmem %s2376_s7, 128 }
0x121c   : > { %p3431_p7 = scmp.ne.s32.totalorder %s2376_s7, %s3430_s1  ;;  %s3603_s21 = smov [#allocation18]  }
0x121d   : > { %s3434_s6 = sshll.u32 %s3603_s21, 4  ;;  %s3435_s6 = int_to_ptr.vmem [resolvable:$false] %s3434_s6 }
0x121e   : > { %s3436_s17 = scalar_lea.vmem %s3435_s6, 256  ;;  %p3437_p0 = scmp.lt.s32.totalorder %s2376_s7, %s3435_s6 }
0x121f   : > { %s2756_s23 = sshll.u32 %s4710_s14, 7  ;;  %p4714_p13 = scmp.ne.s32.totalorder %s4711_s24, 0 }
0x1220   : > { %s4713_s0 = smov %s4712_s18  ;;  %s4498_s28 = scalar_lea.hbm %s4712_s18, %s2756_s23 }
0x1221   : > { %p3432_p2 = pnand %p3431_p7, %p4714_p13  ;;  %p3438_p10 = scmp.lt.s32.totalorder %s3436_s17, %s3430_s1 }
0x1223   : > { %p3433_p5 = pneg %p3432_p2  ;;  %p3439_p6 = por %p3438_p10, %p3437_p0 }
0x1225   : > { %p3440_p9 = pnand %p3439_p6, %p3433_p5 }
0x1227   : > { %3443 = shalt.err (!%p3440_p9)
}
0x1228   : > { %s3444_s22 = scalar_lea.hbm %s4498_s28, 128  ;;  %s3448_s29 = scalar_lea.hbm %s4713_s0, 256 }
0x1229   : > { %p3445_p12 = scmp.ne.s32.totalorder %s4498_s28, %s3444_s22  ;;  %p3449_p3 = scmp.lt.u32.totalorder %s4498_s28, %s4713_s0 }
0x122a   : > { %p3450_p1 = scmp.lt.u32.totalorder %s3448_s29, %s3444_s22  ;;  %p3452_p7 = scmp.lt.u32.totalorder %s3444_s22, %s4498_s28 }
0x122b   : > { %p3446_p8 = pnand %p3445_p12, %p4714_p13 }
0x122c   : > { %p3451_p11 = por %p3450_p1, %p3449_p3 }
0x122d   : > { %p3447_p4 = pneg %p3446_p8 }
0x122e   : > { %p3453_p2 = por %p3452_p7, %p3451_p11 }
0x1230   : > { %p3454_p5 = pnand %p3453_p2, %p3447_p4 }
0x1232   : > { %3457 = shalt.err (!%p3454_p5)
}
0x1233   : > { %2994 = dma.vmem_to_hbm [thread:$0]  (%p4714_p13), %s2376_s7, 128, %s4498_s28, %s2362_s2  }
0x1234 PF: > { %s4715_s8 = sld [smem:[#allocation33_spill]]  ;;  %s4716_s20 = sld [smem:[#allocation27_spill]] }
0x1235   : > { %s4717_s26 = sld [smem:[#allocation40_spill]] }
0x123a   : > { %p3026_p0 = scmp.ge.s32.totalorder %s4715_s8, 2  ;;  %s2387_s16 = sand.u32 1, %s4716_s20  }
0x123b   : > { %p4718_p10 = scmp.ne.s32.totalorder %s4717_s26, 0  ;;  %s2388_s15 = scalar_lea.sflag [#allocation6], %s2387_s16 }
0x123d   : > { %p3022_p6 = pnand %p3026_p0, %p4718_p10 }
0x123f   : > { %3527 = dma.done.wait (!%p3022_p6), %s2388_s15, 128  }
0x1240   : > { %3529 = vsyncadd (!%p3022_p6), %s2388_s15, 4294967168  ;;  %s41_s18 = sadd.s32 1, %s4715_s8   ;;  %s4719_s25 = sld [smem:[#allocation26_spill]] }
0x1241   : > { %p38_p9 = scmp.ge.s32.totalorder %s41_s18, 6   ;;  %s4720_s28 = sld [smem:[#allocation28_spill]] }
0x1242   : > { %s4721_s13 = sld [smem:[#allocation37_spill]]  ;;  %s4722_s14 = sld [smem:[#allocation31_spill]] }
0x1243   : > { %s4723_s15 = sld [smem:[#allocation32_spill]]  ;;  %s4724_s16 = sld [smem:[#allocation35_spill]] }
0x1244   : > { %s4725_s17 = sld [smem:[#allocation42_spill]]  ;;  %s4726_s26 = smov %s3540_s27 }
0x1245   : > { %s4727_s27 = smov %s3959_s11  ;;  %s4728_s29 = smov %s3552_s30 }
0x1246   :  { %40 = sbr.rel (!%p38_p9) target bundleno = 30 (0x1e), region = 227 }
0x1248   : > { %s4729_s30 = smov %s4721_s13 }
0x124d   :  { %2393 = vsyncpa [#allocation5], 1 }
0x124e   :  { %2395 = vsyncpa [#allocation5 + $0x1], 1 }
0x124f   :  { %2396 = vsyncpa [#allocation8], 1 }
0x1250   :  { %2398 = vsyncpa [#allocation8 + $0x1], 1 }
0x1251   :  { %2399 = vsyncpa [#allocation11], 1 }
0x1252   :  { %2401 = vsyncpa [#allocation11 + $0x1], 1 }
0x1253   :  { %2402 = vsyncpa [#allocation14], 1 }
0x1254   :  { %2404 = vsyncpa [#allocation14 + $0x1], 1 }
0x1255   :  { %2405 = vsyncpa [#allocation17], 1 }
0x1256   :  { %2407 = vsyncpa [#allocation17 + $0x1], 1 }
0x1257   :  { %2408 = vsyncpa [#allocation6], 1 }
0x1258   :  { %2410 = vsyncpa [#allocation6 + $0x1], 1 }

</bundles_post_ra>
